<compile_context>
chip_gen: v7x
topology: tpu7x:2x2x1
jax: 0.10.0
libtpu: 0.0.40
codegen_flags: <defaults>
</compile_context>

<pallas_src>
import functools

import jax
import jax.numpy as jnp
from jax import lax
from jax.experimental import pallas as pl
from jax.experimental.pallas import tpu as pltpu


def _avgpool2x2_kernel(p_ref, x_ref, o_ref, *, precision):
    """One row-tile step: (TR, L_in) @ (L_in, L_out) -> (TR, L_out).

    x_ref : (1, TR, L_in)   L_in = k*2*We; each packed row holds k segments,
                            each segment = [input row 2h | input row 2h+1].
    p_ref : (L_in, L_out)   block-diagonal pooling matrix (0.25 at the 4 taps).
    o_ref : (1, TR, L_out)  L_out = k*Wo.
    """
    x = x_ref[0]
    if x.dtype != p_ref.dtype:          # static (trace-time) check; bf16 path skips it
        x = x.astype(p_ref.dtype)
    pooled = lax.dot_general(
        x, p_ref[...],
        dimension_numbers=(((1,), (0,)), ((), ())),
        preferred_element_type=jnp.float32,   # f32 accumulation for all dtypes
        precision=precision,
    )
    o_ref[0] = pooled.astype(o_ref.dtype)


def _pick_pack_factor(rows, wo, itemsize):
    """Largest divisor k of rows with k*Wo <= cap (lane-dense but HBM-bound)."""
    cap = 128 if itemsize >= 4 else 256       # bf16 MXU work is ~6x cheaper -> larger cap
    kmax = min(rows, max(1, cap // max(wo, 1)))
    best = 1
    for k in range(1, kmax + 1):
        if rows % k == 0:
            best = k
    return best


def _pick_row_tile(rows_packed, lane_elems, itemsize, n_batch, target_bytes=2 << 20):
    """Rows per grid step: ~2 MiB real payload, dtype-aligned sublane multiple."""
    mult = 8 * max(1, 4 // itemsize)          # f32: 8, bf16: 16, int8/fp8: 32 sublanes
    if rows_packed <= mult:
        return rows_packed                    # full-dim block (always legal)
    tr = (target_bytes // (lane_elems * itemsize)) // mult * mult
    tr = max(mult, min(tr, (rows_packed // mult) * mult))
    # v7x has 2 TensorCores sharing the ("parallel","parallel") grid: keep at
    # least ~8 independent steps when the shape allows it.
    while n_batch * pl.cdiv(rows_packed, tr) < 8 and tr > mult:
        tr = max(mult, ((tr // 2) // mult) * mult)
    return tr


def transition_forward(x_nchw):
    """Forward of _Transition: AvgPool2d(kernel_size=2, stride=2); NCHW in/out."""
    N, C, H, W = x_nchw.shape
    Ho, Wo = H // 2, W // 2
    if Ho == 0 or Wo == 0:
        return jnp.zeros((N, C, Ho, Wo), x_nchw.dtype)
    if H % 2 or W % 2:
        # PyTorch floor behaviour.  NOTE: for odd spatial dims this crop forces
        # one extra HBM copy before the kernel (the cropped tensor is no longer
        # a contiguous view).  Even-sized inputs (the common case) are copy-free.
        x_nchw = x_nchw[:, :, : 2 * Ho, : 2 * Wo]
    We = 2 * Wo

    dtype = x_nchw.dtype
    itemsize = jnp.dtype(dtype).itemsize
    rows = C * Ho                               # one row per (channel, out-row) pair

    k = _pick_pack_factor(rows, Wo, itemsize)   # lane-packing factor
    rows_packed = rows // k
    L_in = k * 2 * We
    L_out = k * Wo

    # Free view: packed row rp holds k segments (pairs rp*k .. rp*k+k-1),
    # each segment = [input row 2h (We lanes) | input row 2h+1 (We lanes)].
    x_rows = x_nchw.reshape(N, rows_packed, L_in)

    if dtype == jnp.bfloat16:
        mat_dtype = jnp.bfloat16                # 0.25 exact; native bf16 MXU pass
        precision = None
    else:
        mat_dtype = jnp.float32
        precision = lax.Precision.HIGHEST       # Mosaic supports DEFAULT/HIGHEST only

    # Block-diagonal pooling matrix: output column (segment s, w) averages the
    # four taps {2w, 2w+1, We+2w, We+2w+1} of segment s.
    j = jnp.arange(L_in)
    seg = j // (2 * We)
    col = (j % We) // 2
    out_col = seg * Wo + col
    pool_mat = jnp.where(out_col[:, None] == jnp.arange(L_out)[None, :],
                         jnp.asarray(0.25, mat_dtype),
                         jnp.asarray(0.0, mat_dtype))

    tr = _pick_row_tile(rows_packed, L_in, itemsize, N)
    grid = (N, pl.cdiv(rows_packed, tr))

    kernel = functools.partial(_avgpool2x2_kernel, precision=precision)
    out_rows = pl.pallas_call(
        kernel,
        out_shape=jax.ShapeDtypeStruct((N, rows_packed, L_out), dtype),
        grid_spec=pltpu.PrefetchScalarGridSpec(
            num_scalar_prefetch=0,
            grid=grid,
            in_specs=[
                # Pooling matrix: constant block index -> fetched once, resident.
                pl.BlockSpec((L_in, L_out), lambda n, r: (0, 0)),
                pl.BlockSpec((1, tr, L_in), lambda n, r: (n, r, 0)),
            ],
            out_specs=pl.BlockSpec((1, tr, L_out), lambda n, r: (n, r, 0)),
        ),
        compiler_params=pltpu.CompilerParams(
            dimension_semantics=("parallel", "parallel")),
    )(pool_mat, x_rows)

    return out_rows.reshape(N, C, Ho, Wo)       # free view back to NCHW


def _pool_ref(x):
    """Pure-JAX reference: 2x2 non-overlapping average pool with floor cropping."""
    N, C, H, W = x.shape
    Ho, Wo = H // 2, W // 2
    xc = x[:, :, : 2 * Ho, : 2 * Wo].astype(jnp.float32)
    return xc.reshape(N, C, Ho, 2, Wo, 2).mean(axis=(3, 5)).astype(x.dtype)


if __name__ == "__main__":
    key = jax.random.PRNGKey(0)
    k1, k2, k3 = jax.random.split(key, 3)

    # Main f32 test (NCHW, even spatial dims).
    x = jax.random.normal(k1, (2, 4, 16, 16), dtype=jnp.float32)
    out = jax.block_until_ready(transition_forward(x))
    ref = _pool_ref(x)
    assert out.shape == (2, 4, 8, 8), out.shape
    assert jnp.allclose(out, ref, atol=1e-5, rtol=1e-5), \
        float(jnp.max(jnp.abs(out - ref)))

    # Odd spatial dims: floor-cropped exactly like PyTorch AvgPool2d(2, 2).
    x2 = jax.random.normal(k2, (1, 3, 7, 9), dtype=jnp.float32)
    out2 = jax.block_until_ready(transition_forward(x2))
    ref2 = _pool_ref(x2)
    assert out2.shape == (1, 3, 3, 4), out2.shape
    assert jnp.allclose(out2, ref2, atol=1e-5, rtol=1e-5), \
        float(jnp.max(jnp.abs(out2 - ref2)))

    # bf16 fast path (native bf16 x bf16 -> f32 accumulation, lane-dense blocks).
    x3 = jax.random.normal(k3, (2, 32, 32, 32), dtype=jnp.float32).astype(jnp.bfloat16)
    out3 = jax.block_until_ready(transition_forward(x3))
    ref3 = _pool_ref(x3)
    assert out3.shape == (2, 32, 16, 16), out3.shape
    assert jnp.allclose(out3.astype(jnp.float32), ref3.astype(jnp.float32),
                        atol=2e-2, rtol=2e-2), \
        float(jnp.max(jnp.abs(out3.astype(jnp.float32) - ref3.astype(jnp.float32))))

    print("KERNEL_OK")
</pallas_src>

<mosaic_0001>
module attributes {stable_mosaic.version = 11 : i64} {
  func.func @_avgpool2x2_kernel(%arg0: i32, %arg1: i32, %arg2: memref<512x128xf32, #tpu.memory_space<vmem>>, %arg3: memref<1x2x512xf32, #tpu.memory_space<vmem>>, %arg4: memref<1x2x128xf32, #tpu.memory_space<vmem>>) attributes {dimension_semantics = [#tpu.dimension_semantics<parallel>, #tpu.dimension_semantics<parallel>], iteration_bounds = array<i64: 2, 1>, scalar_prefetch = 0 : i64, scratch_operands = 0 : i64, tpu.core_type = #tpu.core_type<tc>, window_params = [{pipeline_mode = #tpu.pipeline_mode<synchronous>, transform_indices = @transform_0, window_bounds = array<i64: 512, 128>}, {transform_indices = @transform_1, window_bounds = array<i64: 1, 2, 512>}, {transform_indices = @transform_2, window_bounds = array<i64: 1, 2, 128>}]} {
    %c0 = arith.constant 0 : index
    %c0_0 = arith.constant 0 : index
    %c0_1 = arith.constant 0 : index
    %0 = vector.load %arg3[%c0, %c0_0, %c0_1] : memref<1x2x512xf32, #tpu.memory_space<vmem>>, vector<1x2x512xf32>
    %1 = vector.shape_cast %0 : vector<1x2x512xf32> to vector<2x512xf32>
    %c0_2 = arith.constant 0 : index
    %c0_3 = arith.constant 0 : index
    %2 = vector.load %arg2[%c0_2, %c0_3] : memref<512x128xf32, #tpu.memory_space<vmem>>, vector<512x128xf32>
    %cst = arith.constant dense<0.000000e+00> : vector<2x128xf32>
    %3 = tpu.matmul %1, %2, %cst {dimension_numbers = #tpu.dot_dimension_numbers<[1], [0], [0], [1], [0, 0, 1, 1], [], []>, precision = #tpu.contract_precision<fp32>} : vector<2x512xf32>, vector<512x128xf32>, vector<2x128xf32> -> vector<2x128xf32>
    %c0_4 = arith.constant 0 : index
    %c0_5 = arith.constant 0 : index
    %c0_6 = arith.constant 0 : index
    %4 = vector.load %arg4[%c0_4, %c0_5, %c0_6] : memref<1x2x128xf32, #tpu.memory_space<vmem>>, vector<1x2x128xf32>
    %5 = vector.shape_cast %4 : vector<1x2x128xf32> to vector<2x128xf32>
    %6 = vector.shape_cast %3 : vector<2x128xf32> to vector<1x2x128xf32>
    tpu.vector_store %arg4[%c0_4, %c0_5, %c0_6], %6 {strides = array<i32>} : memref<1x2x128xf32, #tpu.memory_space<vmem>>, vector<1x2x128xf32>,
    return
  }
  func.func @transform_0(%arg0: i32, %arg1: i32) -> (i32, i32) {
    %c0_i32 = arith.constant 0 : i32
    %c0_i32_0 = arith.constant 0 : i32
    %c0_i32_1 = arith.constant 0 : i32
    return %c0_i32, %c0_i32_0 : i32, i32
  }
  func.func @transform_1(%arg0: i32, %arg1: i32) -> (i32, i32, i32) {
    %c0_i32 = arith.constant 0 : i32
    %c0_i32_0 = arith.constant 0 : i32
    return %arg0, %arg1, %c0_i32 : i32, i32, i32
  }
  func.func @transform_2(%arg0: i32, %arg1: i32) -> (i32, i32, i32) {
    %c0_i32 = arith.constant 0 : i32
    %c0_i32_0 = arith.constant 0 : i32
    return %arg0, %arg1, %c0_i32 : i32, i32, i32
  }
}

</mosaic_0001>

<bundles_post_ra>
// kernel: tpu_custom_call.1
= control target key start
LH: loop header
LB: loop body
LE: loop exit
PB: predicated region body
PF: predicated region fallthrough
CT: control target
= control target key end

     0   :  { %7 = vsyncpa [#allocation3], 0  ;;  %s4530_s0 = inlined_call_operand.hbm [shape: f32[512,128], index: 0, kind: input, shape index: {}]   ;;  %s4531_s1 = inlined_call_operand.hbm [shape: f32[2,2,512], index: 1, kind: input, shape index: {}]   ;;  %s4532_s2 = inlined_call_operand.hbm [shape: f32[2,2,128], index: 2, kind: output, shape index: {}]  }
   0x1   :  { %8 = vsyncpa [#allocation6], 0 }
   0x2   :  { %10 = vsyncpa [#allocation6 + $0x1], 0 }
   0x3   :  { %11 = vsyncpa [#allocation4], 0 }
   0x4   :  { %13 = vsyncpa [#allocation4 + $0x1], 0  ;;  %s3179_s9 = smov 0   ;;  %s3181_s10 = smov 0  }
   0x5   :  { %s3183_s11 = smov 0   ;;  %s3185_s12 = smov 0  }
   0x6   :  { %s3187_s13 = smov 0   ;;  %s3189_s14 = smov 0  }
   0x7 LB: > { %s2114_s15 = sadd.s32 4294967295, %s3156_s14   ;;  %s2115_s16 = sadd.s32 4294967294, %s3156_s14   ;;  %s3156_s14 = sphi %s3189_s14, %s19_s14   ;;  %s3152_s13 = sphi %s3187_s13, %s4929_s13   ;;  %s3148_s12 = sphi %s3185_s12, %s4928_s12   ;;  %s3144_s11 = sphi %s3183_s11, %s4927_s11   ;;  %s3140_s10 = sphi %s3181_s10, %s4926_s10   ;;  %s3136_s9 = sphi %s3179_s9, %s4925_s9  }
   0x8   : > { %p74_p0 = scmp.ne.s32.totalorder %s3140_s10, %s3136_s9  ;;  %p3213_p1 = scmp.eq.s32.totalorder %s2114_s15, 0 }
   0x9   : > { %p3217_p2 = scmp.eq.s32.totalorder %s2114_s15, 1  ;;  %p106_p3 = scmp.eq.s32.totalorder %s2115_s16, 1 }
   0xa   : > { %s4636_s17 = scalar_select %p3213_p1, 1, 0 }
   0xb   : > { %s4637_s18 = scalar_select %p3217_p2, 1, 0 }
   0xc   : > { %p3223_p4 = por %p3213_p1, %p74_p0  ;;  %p2116_p5 = scmp.ge.s32.totalorder %s3156_s14, 1 }
   0xd   : > { %p3228_p6 = por %p106_p3, %p74_p0  ;;  %p113_p7 = scmp.lt.s32.totalorder %s3156_s14, 3 }
   0xe   : > { %s4638_s19 = scalar_select %p3223_p4, 1, 0 }
   0xf   : > { %s4639_s20 = scalar_select %p3228_p6, 1, 0 }
  0x10   : > { %p3233_p8 = pnand %p2116_p5, %p113_p7  ;;  %s3158_s22 = smov [#allocation2]  }
  0x11   : > { %s125_s23 = sshll.u32 %s3158_s22, 4  ;;  %s31_s25 = sadd.s32 1, %s3152_s13  ;;  %s126_s23 = int_to_ptr.vmem [resolvable:$true] %s125_s23 }
  0x12   : > { %s4640_s21 = scalar_select %p3233_p8, 1, 0 }
  0x13   : > { %p2943_p9 = pneg %p3233_p8  ;;  %s3012_s28 = scalar_lea.hbm %s4530_s0, 8192 }
  0x14   : > { %p3013_p12 = scmp.ne.s32.totalorder %s4530_s0, %s3012_s28  ;;  %p3019_p5 = scmp.lt.u32.totalorder %s3012_s28, %s4530_s0 }
  0x15   : > { %p3242_p11 = pnand %p2943_p9, %p3213_p1 }
  0x17   : > { %p3014_p13 = pneg %p3242_p11 }
  0x19   : > { %p3015_p0 = pnand %p3014_p13, %p3013_p12 }
  0x1b   : > { %p3016_p3 = pneg %p3015_p0 }
  0x1d   : > { %p3021_p7 = pnand %p3019_p5, %p3016_p3 }
  0x1f   : > { %3024 = shalt.err (!%p3021_p7)
}
  0x20   : > { %s3025_s5 = scalar_lea.vmem %s126_s23, 8192  ;;  %p3033_p4 = scmp.lt.s32.totalorder %s126_s23, %s126_s23 }
  0x21   : > { %p3026_p9 = scmp.ne.s32.totalorder %s126_s23, %s3025_s5  ;;  %p3034_p1 = scmp.lt.s32.totalorder %s3025_s5, %s3025_s5 }
  0x23   : > { %p3028_p10 = pnand %p3026_p9, %p3014_p13  ;;  %p3035_p8 = por %p3034_p1, %p3033_p4 }
  0x25   : > { %p3029_p6 = pneg %p3028_p10 }
  0x27   : > { %p3036_p2 = pnand %p3035_p8, %p3029_p6 }
  0x29   : > { %3039 = shalt.err (!%p3036_p2)
}
  0x2a   : > { %s3159_s6 = smov 128   ;;  %s3160_s7 = smov 8  }
  0x2b   : > { %2946 = dma.hbm_to_vmem [thread:$0]  (!%p3242_p11), %s4530_s0, 8192, %s126_s23, [#allocation3], %s3159_s6, %s3159_s6, %s3160_s7  }
  0x2c   : > { %p33_p1 = scmp.ge.s32.totalorder %s31_s25, 2  ;;  %s61_s16 = sadd.s32 1, %s3144_s11 }
  0x2d   : > { %p68_p2 = scmp.ne.s32.totalorder %s3144_s11, %s3140_s10  ;;  %p69_p4 = scmp.eq.s32.totalorder %s3156_s14, 0 }
  0x2e   : > { %s4931_s25 = smov (%p33_p1, %s31_s25), 0  ;;  %p4643_p8 = scmp.ne.s32.totalorder %s4637_s18, 0 }
  0x2f   : > { %p3269_p6 = por %p69_p4, %p68_p2  ;;  %s56_s24 = ssub.s32 %s3152_s13, %s4931_s25 }
  0x30   : > { %p3275_p10 = por %p4643_p8, %p68_p2  ;;  %p2956_p12 = scmp.lt.s32.totalorder %s3156_s14, 2 }
  0x31   : > { %p59_p11 = scmp.eq.s32.totalorder %s56_s24, 0  ;;  %s139_s23 = sand.u32 1, %s3144_s11  }
  0x32   : > { %s2119_s27 = sshll.u32 %s139_s23, 3  ;;  %s2130_s29 = sshll.u32 %s3152_s13, 7 }
  0x33   : > { %s3284_s28 = scalar_select %p59_p11, %s3144_s11, %s61_s16  }
  0x34   : > { %s3290_s4 = scalar_lea.hbm %s4531_s1, %s2130_s29  ;;  %s143_s18 = scalar_lea.vmem [#allocation5], %s2119_s27 }
  0x35   : > { %s153_s5 = sshll.u32 %s143_s18, 4  ;;  %p3296_p13 = pnand %p2956_p12, %p3269_p6  ;;  %s3292_s5 = int_to_ptr.vmem [resolvable:$true] %s153_s5 }
  0x36   : > { %s140_s7 = scalar_lea.sflag [#allocation6], %s139_s23  ;;  %s3040_s8 = scalar_lea.hbm %s3290_s4, 128 }
  0x37   : > { %p3041_p0 = scmp.ne.s32.totalorder %s3290_s4, %s3040_s8  ;;  %p3042_p3 = pneg %p3296_p13 }
  0x38   : > { %s3045_s24 = scalar_lea.hbm %s4531_s1, 256  ;;  %p3046_p9 = scmp.lt.u32.totalorder %s3290_s4, %s4531_s1 }
  0x39   : > { %p3043_p5 = pnand %p3042_p3, %p3041_p0  ;;  %p3047_p1 = scmp.lt.u32.totalorder %s3045_s24, %s3040_s8 }
  0x3a   : > { %p3049_p4 = scmp.lt.u32.totalorder %s3040_s8, %s3290_s4 }
  0x3b   : > { %p3044_p7 = pneg %p3043_p5  ;;  %p3048_p2 = por %p3047_p1, %p3046_p9 }
  0x3d   : > { %p3050_p6 = por %p3049_p4, %p3048_p2 }
  0x3f   : > { %p3051_p8 = pnand %p3050_p6, %p3044_p7 }
  0x41   : > { %3054 = shalt.err (!%p3051_p8)
}
  0x42   : > { %s3055_s23 = scalar_lea.vmem %s3292_s5, 128  ;;  %s3161_s29 = smov [#allocation5]  }
  0x43   : > { %p3056_p12 = scmp.ne.s32.totalorder %s3292_s5, %s3055_s23  ;;  %s3060_s30 = sshll.u32 %s3161_s29, 4  ;;  %s3061_s30 = int_to_ptr.vmem [resolvable:$false] %s3060_s30 }
  0x44   : > { %s3062_s3 = scalar_lea.vmem %s3061_s30, 256  ;;  %p3063_p5 = scmp.lt.s32.totalorder %s3292_s5, %s3061_s30 }
  0x45   : > { %p3058_p11 = pnand %p3056_p12, %p3042_p3  ;;  %p3064_p9 = scmp.lt.s32.totalorder %s3062_s3, %s3055_s23 }
  0x47   : > { %p3059_p0 = pneg %p3058_p11  ;;  %p3065_p1 = por %p3064_p9, %p3063_p5 }
  0x49   : > { %p3066_p2 = pnand %p3065_p1, %p3059_p0 }
  0x4b   : > { %3069 = shalt.err (!%p3066_p2)
}
  0x4c   : > { %2950 = dma.hbm_to_vmem [thread:$0]  (!%p3296_p13), %s3290_s4, 128, %s3292_s5, %s140_s7  }
  0x4d   : > { %p4646_p7 = scmp.ne.s32.totalorder %s4640_s21, 0 }
  0x4f   : > { %162 = sbr.rel (%p4646_p7) target bundleno = 556 (0x22c), region = 28 }
  0x56   : > { %p4647_p3 = scmp.ne.s32.totalorder %s4636_s17, 0 }
  0x58   : > { %3123 = dma.done.wait (%p4647_p3), [#allocation3], 8192  }
  0x59   : > { %3125 = vsyncadd (%p4647_p3), [#allocation3], 4294959104  ;;  %s3332_s18 = sand.u32 1, %s3140_s10   ;;  %p4648_p13 = scmp.ne.s32.totalorder %s4638_s19, 0 }
  0x5a   : > { %s2124_s8 = sshll.u32 %s3332_s18, 3  ;;  %s169_s6 = scalar_lea.sflag [#allocation6], %s3332_s18 }
  0x5b   : > { %s3336_s15 = scalar_lea.vmem [#allocation5], %s2124_s8 }
  0x5c   : > { %3127 = dma.done.wait (%p4648_p13), %s169_s6, 128  }
  0x5d   : > { %3129 = vsyncadd (%p4648_p13), %s169_s6, 4294967168  ;;  %v263_v0 = vlaneseq  ;;  %v3162_v1 = vmov 1983009808   ;;  %v210_v3 = vld [vmem:[#allocation2 + $0x80] sm:$0xff]  ;;  %v211_v4 = vld [vmem:[#allocation2 + $0x88] sm:$0xff]  ;;  %s2125_s17 = sshll.u32 %s3332_s18, 1 }
  0x5e   : > { %v261_v2 = vunpack.c.l.s4 %v3162_v1  ;;  %v194_v5 = vld [vmem:[#allocation2] sm:$0xff]  ;;  %v329_v7 = vand.u32 4294901760, %v210_v3  ;;  %v332_v8 = vand.u32 4294901760, %v211_v4  ;;  %v195_v9 = vld [vmem:[#allocation2 + $0x8] sm:$0xff]  ;;  %v212_v11 = vld [vmem:[#allocation2 + $0x90] sm:$0xff]  ;;  %s2127_s19 = sshll.u32 %s3148_s12, 5 }
  0x5f   : > { %v264_v6 = vshrl.u32 %v263_v0, 7  ;;  %v281_v10 = vand.u32 4294901760, %v194_v5  ;;  %v213_v12 = vld [vmem:[#allocation2 + $0x98] sm:$0xff]  ;;  %v284_v14 = vand.u32 4294901760, %v195_v9  ;;  %v335_v15 = vand.u32 4294901760, %v212_v11  ;;  %v196_v17 = vld [vmem:[#allocation2 + $0x10] sm:$0xff]  ;;  %s4481_s16 = scalar_lea.hbm %s4532_s2, %s2127_s19 }
  0x60   : > { %v262_v13 = vunpack.c.0.s8 %v261_v2  ;;  %v338_v16 = vand.u32 4294901760, %v213_v12  ;;  %v197_v18 = vld [vmem:[#allocation2 + $0x18] sm:$0xff]  ;;  %v3342_v19 = vpack.c.bf16 %v332_v8, %v329_v7  ;;  %v287_v21 = vand.u32 4294901760, %v196_v17  ;;  %v214_v23 = vld [vmem:[#allocation2 + $0xa0] sm:$0xff]  ;;  %v215_v24 = vld [vmem:[#allocation2 + $0xa8] sm:$0xff]  ;;  %s192_s21 = scalar_lea.vmem [#allocation7], %s2125_s17 }
  0x61   : > { %v3344_v20 = vsub.f32 %v194_v5, %v281_v10  ;;  %v290_v22 = vand.u32 4294901760, %v197_v18  ;;  %v3346_v25 = vpack.c.bf16 %v284_v14, %v281_v10  ;;  %v3348_v26 = vsub.f32 %v195_v9, %v284_v14  ;;  %v198_v28 = vld [vmem:[#allocation2 + $0x20] sm:$0xff]  ;;  %v199_v29 = vld [vmem:[#allocation2 + $0x28] sm:$0xff]  ;;  %v216_v42 = vld [vmem:[#allocation2 + $0xb0] sm:$0xff]  ;;  %s2020_s4 = sshll.u32 %s192_s21, 4  ;;  %s2006_s24 = scalar_lea.sflag [#allocation4], %s3332_s18  ;;  %s4483_s4 = int_to_ptr.vmem [resolvable:$true] %s2020_s4 }
  0x62   : > { %v3350_v27 = vpack.c.bf16 %v338_v16, %v335_v15  ;;  %2552 = vmatprep.subr.bf16.mxu0 %v3342_v19  ;;  %v3353_v30 = vsub.f32 %v212_v11, %v335_v15  ;;  %v3355_v31 = vsub.f32 %v213_v12, %v338_v16  ;;  %v3359_v33 = vsub.s32 %v262_v13, %v264_v6  ;;  %v217_v47 = vld [vmem:[#allocation2 + $0xb8] sm:$0xff]  ;;  %v200_v60 = vld [vmem:[#allocation2 + $0x30] sm:$0xff]  ;;  %v218_v10 = vld [vmem:[#allocation2 + $0xc0] sm:$0xff]  ;;  %s3070_s22 = scalar_lea.vmem %s4483_s4, 32  ;;  %s3163_s12 = smov [#allocation7]  }
  0x63   : > { %v3357_v32 = vpack.c.bf16 %v290_v22, %v287_v21  ;;  %2554 = vmatpush3.bf16.msra.mxu0 %v3346_v25  ;;  %v341_v34 = vand.u32 4294901760, %v214_v23  ;;  %v344_v35 = vand.u32 4294901760, %v215_v24  ;;  %v3362_v36 = vsub.f32 %v210_v3, %v329_v7  ;;  %v201_v61 = vld [vmem:[#allocation2 + $0x38] sm:$0xff]  ;;  %v219_v11 = vld [vmem:[#allocation2 + $0xc8] sm:$0xff]  ;;  %v202_v16 = vld [vmem:[#allocation2 + $0x40] sm:$0xff]  ;;  %p3071_p4 = scmp.ne.s32.totalorder %s4483_s4, %s3070_s22  ;;  %s3074_s27 = sshll.u32 %s3163_s12, 4  ;;  %s3075_s27 = int_to_ptr.vmem [resolvable:$false] %s3074_s27 }
  0x64   : > { %4649 = vst [vmem:[#allocation11_spill] sm:$0xff] %v3359_v33  ;;  %v3364_v37 = vsub.f32 %v211_v4, %v332_v8  ;;  %2556 = vmatprep.subr.bf16.mxu0 %v3350_v27  ;;  %v293_v38 = vand.u32 4294901760, %v198_v28  ;;  %v296_v39 = vand.u32 4294901760, %v199_v29  ;;  %v4551_v40 = vand.u32 4294901760, %v3344_v20  ;;  %s3076_s23 = scalar_lea.vmem %s3075_s27, 64  ;;  %p3077_p12 = scmp.lt.s32.totalorder %s4483_s4, %s3075_s27 }
  0x65   : > { %v4549_v41 = vand.u32 4294901760, %v3348_v26  ;;  %v3369_v43 = vsub.f32 %v196_v17, %v287_v21  ;;  %v3371_v44 = vsub.f32 %v197_v18, %v290_v22  ;;  %v3373_v45 = vpack.c.bf16 %v344_v35, %v341_v34  ;;  %p3072_p6 = pnand %p3071_p4, %p3275_p10  ;;  %p3078_p11 = scmp.lt.s32.totalorder %s3076_s23, %s3070_s22 }
  0x66   : > { %v4555_v46 = vand.u32 4294901760, %v3362_v36  ;;  %v3376_v48 = vsub.f32 %v214_v23, %v341_v34  ;;  %v3378_v49 = vsub.f32 %v215_v24, %v344_v35  ;;  %v4553_v50 = vand.u32 4294901760, %v3364_v37  ;;  %v203_v34 = vld [vmem:[#allocation2 + $0x48] sm:$0xff] }
  0x67   : > { %v3381_v51 = vpack.c.bf16 %v296_v39, %v293_v38  ;;  %2558 = vmatpush3.bf16.msra.mxu0 %v3357_v32  ;;  %v396_v53 = vsub.f32 %v3344_v20, %v4551_v40  ;;  %v403_v54 = vsub.f32 %v3348_v26, %v4549_v41  ;;  %v347_v55 = vand.u32 4294901760, %v216_v42  ;;  %v225_v41 = vld [vmem:[#allocation2 + $0xf8] sm:$0xff]  ;;  %p3073_p8 = pneg %p3072_p6  ;;  %p3079_p0 = por %p3078_p11, %p3077_p12 }
  0x68   : > { %v508_v52 = vsub.f32 %v3362_v36, %v4555_v46  ;;  %2560 = vmatprep.subr.bf16.mxu0 %v3373_v45  ;;  %v515_v56 = vsub.f32 %v3364_v37, %v4553_v50  ;;  %v350_v57 = vand.u32 4294901760, %v217_v47  ;;  %v4548_v58 = vand.u32 4294901760, %v3353_v30 }
  0x69   : > { %v4546_v59 = vand.u32 4294901760, %v3355_v31  ;;  %v3399_v63 = vsub.f32 %v198_v28, %v293_v38  ;;  %v397_v0 = vand.u32 4294901760, %v396_v53  ;;  %v404_v1 = vand.u32 4294901760, %v403_v54  ;;  %p3080_p5 = pnand %p3079_p0, %p3073_p8 }
  0x6a   : > { %v509_v62 = vand.u32 4294901760, %v508_v52  ;;  %v516_v2 = vand.u32 4294901760, %v515_v56  ;;  %v3401_v3 = vsub.f32 %v199_v29, %v296_v39  ;;  %v3403_v4 = vpack.c.bf16 %v350_v57, %v347_v55 }
  0x6b   : > { %v522_v5 = vsub.f32 %v3353_v30, %v4548_v58  ;;  %2562 = vmatpush3.bf16.msra.mxu0 %v3381_v51  ;;  %v2585_v6 = vpack.c.bf16 %v404_v1, %v397_v0  ;;  %v529_v7 = vsub.f32 %v3355_v31, %v4546_v59  ;;  %v299_v8 = vand.u32 4294901760, %v200_v60  ;;  %v220_v0 = vld [vmem:[#allocation2 + $0xd0] sm:$0xff]  ;;  %v221_v1 = vld [vmem:[#allocation2 + $0xd8] sm:$0xff] }
  0x6c   : > { %v302_v9 = vand.u32 4294901760, %v201_v61  ;;  %v2583_v12 = vpack.c.bf16 %v516_v2, %v509_v62  ;;  %2564 = vmatprep.subr.bf16.mxu0 %v3403_v4  ;;  %v4544_v14 = vand.u32 4294901760, %v3369_v43  ;;  %v4543_v15 = vand.u32 4294901760, %v3371_v44  ;;  %v224_v58 = vld [vmem:[#allocation2 + $0xf0] sm:$0xff] }
  0x6d   : > { %v523_v13 = vand.u32 4294901760, %v522_v5  ;;  %v3415_v17 = vsub.f32 %v216_v42, %v347_v55  ;;  %v3417_v18 = vsub.f32 %v217_v47, %v350_v57  ;;  %v530_v21 = vand.u32 4294901760, %v529_v7 }
  0x6e   : > { %v3419_v22 = vpack.c.bf16 %v302_v9, %v299_v8  ;;  %2584 = vmatprep.subr.bf16.mxu1 %v2583_v12  ;;  %v410_v23 = vsub.f32 %v3369_v43, %v4544_v14  ;;  %v417_v24 = vsub.f32 %v3371_v44, %v4543_v15  ;;  %v353_v28 = vand.u32 4294901760, %v218_v10 }
  0x6f   : > { %v356_v29 = vand.u32 4294901760, %v219_v11  ;;  %2586 = vmatpush3.bf16.msra.mxu1 %v2585_v6  ;;  %v2587_v35 = vpack.c.bf16 %v530_v21, %v523_v13  ;;  %v4541_v38 = vand.u32 4294901760, %v3376_v48  ;;  %v4539_v39 = vand.u32 4294901760, %v3378_v49  ;;  %v204_v6 = vld [vmem:[#allocation2 + $0x50] sm:$0xff] }
  0x70   : > { %2566 = vmatpush3.bf16.msra.mxu0 %v3419_v22  ;;  %v305_v42 = vand.u32 4294901760, %v202_v16  ;;  %v3430_v47 = vsub.f32 %v200_v60, %v299_v8  ;;  %v411_v52 = vand.u32 4294901760, %v410_v23  ;;  %v418_v53 = vand.u32 4294901760, %v417_v24  ;;  %v205_v24 = vld [vmem:[#allocation2 + $0x58] sm:$0xff] }
  0x71   : > { %v3432_v54 = vpack.c.bf16 %v356_v29, %v353_v28  ;;  %2588 = vmatprep.subr.bf16.mxu1 %v2587_v35  ;;  %v3434_v55 = vsub.f32 %v201_v61, %v302_v9  ;;  %v536_v56 = vsub.f32 %v3376_v48, %v4541_v38  ;;  %v543_v57 = vsub.f32 %v3378_v49, %v4539_v39  ;;  %v223_v39 = vld [vmem:[#allocation2 + $0xe8] sm:$0xff] }
  0x72   : > { %v308_v62 = vand.u32 4294901760, %v203_v34  ;;  %v2589_v60 = vpack.c.bf16 %v418_v53, %v411_v52  ;;  %v3443_v2 = vsub.f32 %v218_v10, %v353_v28  ;;  %v4538_v5 = vand.u32 4294901760, %v3399_v63 }
  0x73   : > { %2568 = vmatprep.subr.bf16.mxu0 %v3432_v54  ;;  %v4537_v61 = vand.u32 4294901760, %v3401_v3  ;;  %v3447_v7 = vsub.f32 %v219_v11, %v356_v29  ;;  %v537_v8 = vand.u32 4294901760, %v536_v56  ;;  %v544_v9 = vand.u32 4294901760, %v543_v57 }
  0x74   : > { %v3449_v12 = vpack.c.bf16 %v308_v62, %v305_v42  ;;  %2590 = vmatpush3.bf16.msra.mxu1 %v2589_v60  ;;  %v424_v13 = vsub.f32 %v3399_v63, %v4538_v5  ;;  %v359_v21 = vand.u32 4294901760, %v220_v0  ;;  %v362_v23 = vand.u32 4294901760, %v221_v1  ;;  %v222_v5 = vld [vmem:[#allocation2 + $0xe0] sm:$0xff] }
  0x75   : > { %v431_v10 = vsub.f32 %v3401_v3, %v4537_v61  ;;  %v2591_v28 = vpack.c.bf16 %v544_v9, %v537_v8  ;;  %v4540_v11 = vand.u32 4294901760, %v3415_v17  ;;  %v4542_v29 = vand.u32 4294901760, %v3417_v18 }
  0x76   : > { %2570 = vmatpush3.bf16.msra.mxu0 %v3449_v12  ;;  %v311_v35 = vand.u32 4294901760, %v204_v6  ;;  %v3460_v52 = vsub.f32 %v202_v16, %v305_v42  ;;  %v425_v53 = vand.u32 4294901760, %v424_v13  ;;  %v3462_v57 = vpack.c.bf16 %v362_v23, %v359_v21 }
  0x77   : > { %v432_v56 = vand.u32 4294901760, %v431_v10  ;;  %2592 = vmatprep.subr.bf16.mxu1 %v2591_v28  ;;  %v3464_v60 = vsub.f32 %v203_v34, %v308_v62  ;;  %v550_v8 = vsub.f32 %v3415_v17, %v4540_v11  ;;  %v557_v9 = vsub.f32 %v3417_v18, %v4542_v29  ;;  %v206_v62 = vld [vmem:[#allocation2 + $0x60] sm:$0xff]  ;;  %v207_v29 = vld [vmem:[#allocation2 + $0x68] sm:$0xff] }
  0x78   : > { %4650 = vst [vmem:[#allocation12_spill] sm:$0xff] %v3462_v57  ;;  %v314_v61 = vand.u32 4294901760, %v205_v24  ;;  %2572 = vmatprep.subr.bf16.mxu0 %v3462_v57  ;;  %v3473_v42 = vsub.f32 %v220_v0, %v359_v21  ;;  %v4545_v13 = vand.u32 4294901760, %v3430_v47  ;;  %v4547_v34 = vand.u32 4294901760, %v3434_v55 }
  0x79   : > { %v2593_v16 = vpack.c.bf16 %v432_v56, %v425_v53  ;;  %v3477_v10 = vsub.f32 %v221_v1, %v362_v23  ;;  %v551_v28 = vand.u32 4294901760, %v550_v8  ;;  %v558_v11 = vand.u32 4294901760, %v557_v9 }
  0x7a   : > { %v3479_v38 = vpack.c.bf16 %v314_v61, %v311_v35  ;;  %v438_v53 = vsub.f32 %v3430_v47, %v4545_v13  ;;  %v445_v0 = vsub.f32 %v3434_v55, %v4547_v34  ;;  %v365_v21 = vand.u32 4294901760, %v222_v5 }
  0x7b   : > { %2594 = vmatpush3.bf16.msra.mxu1 %v2593_v16  ;;  %v368_v56 = vand.u32 4294901760, %v223_v39  ;;  %v2595_v15 = vpack.c.bf16 %v558_v11, %v551_v28  ;;  %v4550_v1 = vand.u32 4294901760, %v3443_v2  ;;  %v4552_v23 = vand.u32 4294901760, %v3447_v7 }
  0x7c   : > { %4651 = vst [vmem:[#allocation13_spill] sm:$0xff] %v3479_v38  ;;  %2574 = vmatpush3.bf16.msra.mxu0 %v3479_v38  ;;  %v317_v8 = vand.u32 4294901760, %v206_v62  ;;  %v3490_v9 = vsub.f32 %v204_v6, %v311_v35  ;;  %v439_v16 = vand.u32 4294901760, %v438_v53  ;;  %v446_v14 = vand.u32 4294901760, %v445_v0 }
  0x7d   : > { %v3492_v13 = vpack.c.bf16 %v368_v56, %v365_v21  ;;  %2596 = vmatprep.subr.bf16.mxu1 %v2595_v15  ;;  %v3494_v59 = vsub.f32 %v205_v24, %v314_v61  ;;  %v564_v11 = vsub.f32 %v3443_v2, %v4550_v1  ;;  %v571_v28 = vsub.f32 %v3447_v7, %v4552_v23  ;;  %v208_v24 = vld [vmem:[#allocation2 + $0x70] sm:$0xff]  ;;  %v209_v23 = vld [vmem:[#allocation2 + $0x78] sm:$0xff] }
  0x7e   : > { %v320_v34 = vand.u32 4294901760, %v207_v29  ;;  %v2597_v6 = vpack.c.bf16 %v446_v14, %v439_v16  ;;  %v3503_v35 = vsub.f32 %v222_v5, %v365_v21  ;;  %v4554_v15 = vand.u32 4294901760, %v3460_v52 }
  0x7f   : > { %4652 = vst [vmem:[#allocation14_spill] sm:$0xff] %v3492_v13  ;;  %2576 = vmatprep.subr.bf16.mxu0 %v3492_v13  ;;  %v4556_v61 = vand.u32 4294901760, %v3464_v60  ;;  %v3507_v53 = vsub.f32 %v223_v39, %v368_v56  ;;  %v565_v0 = vand.u32 4294901760, %v564_v11  ;;  %v572_v1 = vand.u32 4294901760, %v571_v28  ;;  %v3533_v13 = vld [vmem:[%s3336_s15] sm:$0xff] }
  0x80   : > { %v3509_v40 = vpack.c.bf16 %v320_v34, %v317_v8  ;;  %2598 = vmatpush3.bf16.msra.mxu1 %v2597_v6  ;;  %v452_v14 = vsub.f32 %v3460_v52, %v4554_v15  ;;  %v371_v21 = vand.u32 4294901760, %v224_v58  ;;  %v374_v16 = vand.u32 4294901760, %v225_v41  ;;  %4655 = vst [vmem:[#allocation17_spill] sm:$0xff] %v3533_v13 }
  0x81   : > { %v459_v5 = vsub.f32 %v3464_v60, %v4556_v61  ;;  %v2599_v50 = vpack.c.bf16 %v572_v1, %v565_v0  ;;  %v4561_v39 = vand.u32 4294901760, %v3473_v42  ;;  %v4562_v56 = vand.u32 4294901760, %v3477_v10 }
  0x82   : > { %4653 = vst [vmem:[#allocation15_spill] sm:$0xff] %v3509_v40  ;;  %2578 = vmatpush3.bf16.msra.mxu0 %v3509_v40  ;;  %v323_v11 = vand.u32 4294901760, %v208_v24  ;;  %v3520_v28 = vsub.f32 %v206_v62, %v317_v8  ;;  %v453_v6 = vand.u32 4294901760, %v452_v14  ;;  %v3522_v46 = vpack.c.bf16 %v374_v16, %v371_v21 }
  0x83   : > { %v460_v15 = vand.u32 4294901760, %v459_v5  ;;  %2600 = vmatprep.subr.bf16.mxu1 %v2599_v50  ;;  %v3524_v61 = vsub.f32 %v207_v29, %v320_v34  ;;  %v578_v1 = vsub.f32 %v3473_v42, %v4561_v39  ;;  %v585_v0 = vsub.f32 %v3477_v10, %v4562_v56 }
  0x84   : > { %4654 = vst [vmem:[#allocation16_spill] sm:$0xff] %v3522_v46  ;;  %v326_v40 = vand.u32 4294901760, %v209_v23  ;;  %2580 = vmatprep.subr.bf16.mxu0 %v3522_v46  ;;  %v3536_v8 = vsub.f32 %v224_v58, %v371_v21  ;;  %v4564_v50 = vand.u32 4294901760, %v3490_v9  ;;  %v4563_v29 = vand.u32 4294901760, %v3494_v59 }
  0x85   : > { %v2601_v62 = vpack.c.bf16 %v460_v15, %v453_v6  ;;  %v3540_v34 = vsub.f32 %v225_v41, %v374_v16  ;;  %v579_v14 = vand.u32 4294901760, %v578_v1  ;;  %v586_v5 = vand.u32 4294901760, %v585_v0 }
  0x86   : > { %v3542_v39 = vpack.c.bf16 %v326_v40, %v323_v11  ;;  %v3544_v56 = vsub.f32 %v208_v24, %v323_v11  ;;  %v466_v15 = vsub.f32 %v3490_v9, %v4564_v50  ;;  %v473_v58 = vsub.f32 %v3494_v59, %v4563_v29 }
  0x87   : > { %4656 = vst [vmem:[#allocation18_spill] sm:$0xff] %v3540_v34  ;;  %2602 = vmatpush3.bf16.msra.mxu1 %v2601_v62  ;;  %v266_v21 = vrot.slane %v3533_v13, %v3359_v33  ;;  %v2603_v41 = vpack.c.bf16 %v586_v5, %v579_v14  ;;  %v4570_v16 = vand.u32 4294901760, %v3503_v35  ;;  %v4573_v6 = vand.u32 4294901760, %v3507_v53 }
  0x88   : > { %4657 = vst [vmem:[#allocation19_spill] sm:$0xff] %v3542_v39  ;;  %2582 = vmatpush3.bf16.msra.mxu0 %v3542_v39  ;;  %v2615_v24 = vpack.c.bf16 %v3364_v37, %v3362_v36  ;;  %v467_v11 = vand.u32 4294901760, %v466_v15  ;;  %v474_v1 = vand.u32 4294901760, %v473_v58  ;;  %v4571_v5 = vand.u32 4294901760, %v3520_v28 }
  0x89   : > { %v274_v0 = vcombine.high %v266_v21, %v266_v21  ;;  %v3559_v62 = vand.u32 4294901760, %v266_v21  ;;  %2604 = vmatprep.subr.bf16.mxu1 %v2603_v41  ;;  %v592_v29 = vsub.f32 %v3503_v35, %v4570_v16  ;;  %v599_v14 = vsub.f32 %v3507_v53, %v4573_v6 }
  0x8a   : > { %2616 = vmatprep.subr.bf16.mxu0 %v2615_v24  ;;  %v4572_v50 = vand.u32 4294901760, %v3524_v61  ;;  %v3569_v33 = vsub.f32 %v209_v23, %v326_v40  ;;  %v2605_v15 = vpack.c.bf16 %v474_v1, %v467_v11  ;;  %v480_v16 = vsub.f32 %v3520_v28, %v4571_v5 }
  0x8b   : > { %v3571_v58 = vand.u32 4294901760, %v274_v0  ;;  %v3574_v41 = vsub.f32 %v266_v21, %v3559_v62  ;;  %v593_v39 = vand.u32 4294901760, %v592_v29  ;;  %v600_v46 = vand.u32 4294901760, %v599_v14 }
  0x8c   : > { %v487_v24 = vsub.f32 %v3524_v61, %v4572_v50  ;;  %2606 = vmatpush3.bf16.msra.mxu1 %v2605_v15  ;;  %v605_v11 = vand.u32 4294901760, %v3536_v8  ;;  %v612_v21 = vand.u32 4294901760, %v3540_v34  ;;  %v481_v1 = vand.u32 4294901760, %v480_v16 }
  0x8d   : > { %4658 = vst [vmem:[#allocation20_spill] sm:$0xff] %v3571_v58  ;;  %4659 = vst [vmem:[#allocation21_spill] sm:$0xff] %v3574_v41  ;;  %v3583_v40 = vsub.f32 %v274_v0, %v3571_v58  ;;  %v4580_v23 = vand.u32 4294901760, %v3574_v41  ;;  %617 = vmatprep.mubr.f32.mxu1 %v3571_v58  ;;  %v2607_v29 = vpack.c.bf16 %v600_v46, %v593_v39  ;;  %v493_v13 = vand.u32 4294901760, %v3544_v56 }
  0x8e   : > { %v488_v14 = vand.u32 4294901760, %v487_v24  ;;  %v606_v0 = vsub.f32 %v3536_v8, %v605_v11  ;;  %v613_v50 = vsub.f32 %v3540_v34, %v612_v21  ;;  %v500_v38 = vand.u32 4294901760, %v3569_v33 }
  0x8f   : > { %v378_v5 = vand.u32 4294901760, %v3583_v40  ;;  %v385_v15 = vsub.f32 %v3574_v41, %v4580_v23  ;;  %2608 = vmatprep.subr.bf16.mxu1 %v2607_v29  ;;  %v494_v58 = vsub.f32 %v3544_v56, %v493_v13  ;;  %v2617_v57 = vpack.c.bf16 %v3348_v26, %v3344_v20 }
  0x90   : > { %v2609_v6 = vpack.c.bf16 %v488_v14, %v481_v1  ;;  %v607_v39 = vand.u32 4294901760, %v606_v0  ;;  %v614_v16 = vand.u32 4294901760, %v613_v50  ;;  %v501_v23 = vsub.f32 %v3569_v33, %v500_v38 }
  0x91   : > { %v379_v46 = vsub.f32 %v3583_v40, %v378_v5  ;;  %v386_v24 = vand.u32 4294901760, %v385_v15  ;;  %v2619_v1 = vpack.c.bf16 %v3355_v31, %v3353_v30  ;;  %v495_v14 = vand.u32 4294901760, %v494_v58 }
  0x92   : > { %2610 = vmatpush3.bf16.msra.mxu1 %v2609_v6  ;;  %v2611_v29 = vpack.c.bf16 %v614_v16, %v607_v39  ;;  %v502_v34 = vand.u32 4294901760, %v501_v23  ;;  %v2621_v6 = vpack.c.bf16 %v3371_v44, %v3369_v43  ;;  %v2623_v15 = vpack.c.bf16 %v3378_v49, %v3376_v48 }
  0x93   : > { %v380_v41 = vand.u32 4294901760, %v379_v46  ;;  %v4660_v0 = vand.u32 4294901760, %v3362_v36  ;;  %v4661_v46 = vand.u32 4294901760, %v3364_v37  ;;  %v4662_v58 = vand.u32 4294901760, %v3344_v20 }
  0x94   : > { %2612 = vmatprep.subr.bf16.mxu1 %v2611_v29  ;;  %v2613_v50 = vpack.c.bf16 %v502_v34, %v495_v14  ;;  %v4664_v23 = vand.u32 4294901760, %v3353_v30  ;;  %v4665_v16 = vand.u32 4294901760, %v3355_v31  ;;  %v4666_v36 = vand.u32 4294901760, %v3369_v43 }
  0x95   : > { %381 = vmatprep.mubr.f32.mxu0 %v380_v41  ;;  %v3613_v39 = vpack.c.bf16 %v4661_v46, %v4660_v0  ;;  %v4663_v41 = vand.u32 4294901760, %v3348_v26  ;;  %v4667_v37 = vand.u32 4294901760, %v3371_v44  ;;  %v4668_v20 = vand.u32 4294901760, %v3376_v48 }
  0x96   : > { %387 = vmatmul.mubr.f32.vlgmr.msra.gmra.mrb[0].mxu0 %v386_v24  ;;  %v3625_v24 = vpack.c.bf16 %v4665_v16, %v4664_v23  ;;  %2614 = vmatpush3.bf16.msra.mxu1 %v2613_v50  ;;  %v4669_v26 = vand.u32 4294901760, %v3378_v49  ;;  %v4670_v30 = vand.u32 4294901760, %v3399_v63  ;;  %v4671_v31 = vand.u32 4294901760, %v3401_v3 }
  0x97   : > { %2618 = vmatpush3.bf16.msra.mxu0 %v2617_v57  ;;  %754 = vmatprep.mubr.f32.mxu0 %v3583_v40  ;;  %v3619_v34 = vpack.c.bf16 %v4663_v41, %v4662_v58  ;;  %v3631_v57 = vpack.c.bf16 %v4667_v37, %v4666_v36  ;;  %v4672_v43 = vand.u32 4294901760, %v3415_v17  ;;  %v4673_v44 = vand.u32 4294901760, %v3417_v18 }
  0x98   : > { %2620 = vmatprep.subr.bf16.mxu0 %v2619_v1  ;;  %v3637_v40 = vpack.c.bf16 %v4669_v26, %v4668_v20  ;;  %v3643_v29 = vpack.c.bf16 %v4671_v31, %v4670_v30  ;;  %2648 = vmatprep.subr.bf16.mxu1 %v3342_v19  ;;  %v4674_v48 = vand.u32 4294901760, %v3430_v47  ;;  %v4675_v49 = vand.u32 4294901760, %v3434_v55 }
  0x99   : > { %v3650_v1 = vpack.c.bf16 %v4673_v44, %v4672_v43  ;;  %v4676_v50 = vand.u32 4294901760, %v3443_v2  ;;  %v4677_v0 = vand.u32 4294901760, %v3447_v7  ;;  %v4678_v58 = vand.u32 4294901760, %v3460_v52  ;;  %619 = vmatmul.mubr.f32.vlgmr.msra.gmra.mrb[0].mxu1 %v3559_v62 }
  0x9a   : > { %v3656_v14 = vpack.c.bf16 %v4675_v49, %v4674_v48  ;;  %v4679_v41 = vand.u32 4294901760, %v3464_v60  ;;  %v4680_v16 = vand.u32 4294901760, %v3473_v42  ;;  %v4681_v36 = vand.u32 4294901760, %v3477_v10  ;;  %2650 = vmatpush3.bf16.msra.mxu1 %v3346_v25  ;;  %861 = vmatprep.mubr.f32.mxu1 %v378_v5  ;;  %v245_v5 = vld [vmem:[#allocation2 + $0x198] sm:$0xff] }
  0x9b   : > { %v3662_v46 = vpack.c.bf16 %v4677_v0, %v4676_v50  ;;  %v4682_v20 = vand.u32 4294901760, %v3490_v9  ;;  %v4683_v26 = vand.u32 4294901760, %v3494_v59  ;;  %v4684_v31 = vand.u32 4294901760, %v3503_v35  ;;  %2622 = vmatpush3.bf16.msra.mxu0 %v2621_v6  ;;  %2652 = vmatprep.subr.bf16.mxu1 %v3350_v27 }
  0x9c   : > { %v3668_v23 = vpack.c.bf16 %v4679_v41, %v4678_v58  ;;  %v3674_v37 = vpack.c.bf16 %v4681_v36, %v4680_v16  ;;  %v4685_v43 = vand.u32 4294901760, %v3507_v53  ;;  %v4686_v48 = vand.u32 4294901760, %v3520_v28  ;;  %2624 = vmatprep.subr.bf16.mxu0 %v2623_v15 }
  0x9d   : > { %v3680_v30 = vpack.c.bf16 %v4683_v26, %v4682_v20  ;;  %v4687_v49 = vand.u32 4294901760, %v3524_v61  ;;  %v2625_v0 = vpack.c.bf16 %v3401_v3, %v3399_v63  ;;  %v3697_v58 = vpack.c.bf16 %v612_v21, %v605_v11  ;;  %v4691_v11 = vld [vmem:[#allocation14_spill] sm:$0xff] }
  0x9e   : > { %v3686_v44 = vpack.c.bf16 %v4685_v43, %v4684_v31  ;;  %v3699_v41 = vpack.c.bf16 %v500_v38, %v493_v13  ;;  %v2627_v16 = vpack.c.bf16 %v3417_v18, %v3415_v17  ;;  %v2629_v6 = vpack.c.bf16 %v3434_v55, %v3430_v47  ;;  %2654 = vmatpush3.bf16.msra.mxu1 %v3357_v32  ;;  %v242_v38 = vld [vmem:[#allocation2 + $0x180] sm:$0xff]  ;;  %v243_v47 = vld [vmem:[#allocation2 + $0x188] sm:$0xff]  ;;  %v3739_v31 = vld [vmem:[#allocation2 + $0x110] sm:$0xff] }
  0x9f   : > { %v3692_v50 = vpack.c.bf16 %v4687_v49, %v4686_v48  ;;  %2626 = vmatpush3.bf16.msra.mxu0 %v2625_v0  ;;  %v2631_v63 = vpack.c.bf16 %v3447_v7, %v3443_v2  ;;  %2656 = vmatprep.subr.bf16.mxu1 %v3373_v45  ;;  %v2633_v3 = vpack.c.bf16 %v3464_v60, %v3460_v52  ;;  %v1191_v2 = vand.u32 4294901760, %v242_v38  ;;  %v3745_v43 = vld [vmem:[#allocation2 + $0x1a0] sm:$0xff] }
  0xa0   : > { %2628 = vmatprep.subr.bf16.mxu0 %v2627_v16  ;;  %v2635_v17 = vpack.c.bf16 %v3477_v10, %v3473_v42  ;;  %v2637_v18 = vpack.c.bf16 %v3494_v59, %v3490_v9  ;;  %v2639_v55 = vpack.c.bf16 %v3507_v53, %v3503_v35  ;;  %v1194_v7 = vand.u32 4294901760, %v243_v47  ;;  %v4688_v59 = vld [vmem:[#allocation18_spill] sm:$0xff]  ;;  %v4689_v42 = vld [vmem:[#allocation12_spill] sm:$0xff]  ;;  %v4694_v48 = vld [vmem:[#allocation17_spill] sm:$0xff] }
  0xa1   : > { %v2641_v52 = vpack.c.bf16 %v3524_v61, %v3520_v28  ;;  %v2643_v60 = vpack.c.bf16 %v4688_v59, %v3536_v8  ;;  %v3729_v13 = vsub.f32 %v242_v38, %v1191_v2  ;;  %v226_v9 = vld [vmem:[#allocation2 + $0x100] sm:$0xff]  ;;  %v227_v35 = vld [vmem:[#allocation2 + $0x108] sm:$0xff]  ;;  %v2645_v53 = vpack.c.bf16 %v3569_v33, %v3544_v56  ;;  %v244_v28 = vld [vmem:[#allocation2 + $0x190] sm:$0xff]  ;;  %4693 = vst [vmem:[#allocation18_spill] sm:$0xff] %v3745_v43 }
  0xa2   : > { %2658 = vmatpush3.bf16.msra.mxu1 %v3381_v51  ;;  %v3731_v10 = vsub.f32 %v243_v47, %v1194_v7  ;;  %v4690_v61 = vld [vmem:[#allocation13_spill] sm:$0xff]  ;;  %v1143_v8 = vand.u32 4294901760, %v226_v9  ;;  %v1146_v21 = vand.u32 4294901760, %v227_v35  ;;  %v1197_v20 = vand.u32 4294901760, %v244_v28  ;;  %v4692_v33 = vld [vmem:[#allocation15_spill] sm:$0xff]  ;;  %v4695_v0 = vld [vmem:[#allocation16_spill] sm:$0xff] }
  0xa3   : > { %2630 = vmatpush3.bf16.msra.mxu0 %v2629_v6  ;;  %2660 = vmatprep.subr.bf16.mxu1 %v3403_v4  ;;  %v4587_v15 = vand.u32 4294901760, %v3729_v13  ;;  %v1200_v26 = vand.u32 4294901760, %v245_v5  ;;  %v3743_v56 = vld [vmem:[#allocation2 + $0x118] sm:$0xff]  ;;  %v4588_v38 = vand.u32 4294901760, %v3739_v31 }
  0xa4   : > { %2632 = vmatprep.subr.bf16.mxu0 %v2631_v63  ;;  %v4586_v36 = vand.u32 4294901760, %v3731_v10  ;;  %v3750_v16 = vsub.f32 %v226_v9, %v1143_v8  ;;  %v3752_v6 = vsub.f32 %v227_v35, %v1146_v21  ;;  %v3754_v63 = vld [vmem:[#allocation2 + $0x1a8] sm:$0xff]  ;;  %v4701_v59 = vld [vmem:[#allocation20_spill] sm:$0xff] }
  0xa5   : > { %4696 = vst [vmem:[#allocation12_spill] sm:$0xff] %v3754_v63  ;;  %v1370_v47 = vsub.f32 %v3729_v13, %v4587_v15  ;;  %v3780_v35 = vld [vmem:[#allocation2 + $0x1b8] sm:$0xff] }
  0xa6   : > { %2662 = vmatpush3.bf16.msra.mxu1 %v3419_v22  ;;  %4702 = vst [vmem:[#allocation17_spill] sm:$0xff] %v3780_v35  ;;  %v4591_v49 = vand.u32 4294901760, %v3750_v16  ;;  %v4592_v9 = vand.u32 4294901760, %v3752_v6  ;;  %v4595_v15 = vand.u32 4294901760, %v3780_v35 }
  0xa7   : > { %2634 = vmatpush3.bf16.msra.mxu0 %v2633_v3  ;;  %2664 = vmatprep.subr.bf16.mxu1 %v3432_v54  ;;  %v3756_v3 = vld [vmem:[#allocation2 + $0x120] sm:$0xff] }
  0xa8   : > { %2636 = vmatprep.subr.bf16.mxu0 %v2635_v17  ;;  %4697 = vst [vmem:[#allocation13_spill] sm:$0xff] %v3756_v3  ;;  %v4699_v17 = vld [vmem:[#allocation21_spill] sm:$0xff] }
  0xaa   : > { %2666 = vmatpush3.bf16.msra.mxu1 %v3449_v12 }
  0xab   : > { %2638 = vmatpush3.bf16.msra.mxu0 %v2637_v18  ;;  %2668 = vmatprep.subr.bf16.mxu1 %v4689_v42  ;;  %v3761_v18 = vpack.c.bf16 %v1194_v7, %v1191_v2  ;;  %v3776_v2 = vsub.f32 %v245_v5, %v1200_v26  ;;  %v4589_v7 = vand.u32 4294901760, %v3743_v56  ;;  %v3790_v5 = vpack.c.bf16 %v1200_v26, %v1197_v20 }
  0xac   : > { %2640 = vmatprep.subr.bf16.mxu0 %v2639_v55  ;;  %v1377_v55 = vsub.f32 %v3731_v10, %v4586_v36  ;;  %v3784_v36 = vpack.c.bf16 %v1146_v21, %v1143_v8  ;;  %v3798_v8 = vsub.f32 %v3739_v31, %v4588_v38  ;;  %v1371_v21 = vand.u32 4294901760, %v1370_v47  ;;  %v3816_v38 = vld [vmem:[#allocation2 + $0x130] sm:$0xff] }
  0xad   : > { %4705 = vst [vmem:[#allocation21_spill] sm:$0xff] %v3790_v5  ;;  %v4707_v26 = vand.u32 4294901760, %v3745_v43  ;;  %4708 = vst [vmem:[#allocation20_spill] sm:$0xff] %v3816_v38 }
  0xae   : > { %2670 = vmatpush3.bf16.msra.mxu1 %v4690_v61  ;;  %4704 = vst [vmem:[#allocation16_spill] sm:$0xff] %v3784_v36 }
  0xaf   : > { %2642 = vmatpush3.bf16.msra.mxu0 %v2641_v52  ;;  %2672 = vmatprep.subr.bf16.mxu1 %v4691_v11  ;;  %v3770_v52 = vld [vmem:[#allocation2 + $0x1b0] sm:$0xff] }
  0xb0   : > { %2644 = vmatprep.subr.bf16.mxu0 %v2643_v60  ;;  %4700 = vst [vmem:[#allocation15_spill] sm:$0xff] %v3770_v52  ;;  %v3774_v60 = vsub.f32 %v244_v28, %v1197_v20  ;;  %v3807_v20 = vsub.f32 %v3743_v56, %v4589_v7 }
  0xb2   : > { %2674 = vmatpush3.bf16.msra.mxu1 %v4692_v33 }
  0xb3   : > { %2646 = vmatpush3.bf16.msra.mxu0 %v2645_v53  ;;  %2676 = vmatprep.subr.bf16.mxu1 %v4695_v0  ;;  %v4703_v53 = vld [vmem:[#allocation19_spill] sm:$0xff] }
  0xb4   : > { %2680 = vmatprep.subr.bf16.mxu0 %v3613_v39  ;;  %v3758_v39 = vld [vmem:[#allocation2 + $0x128] sm:$0xff] }
  0xb5   : > { %4698 = vst [vmem:[#allocation14_spill] sm:$0xff] %v3758_v39  ;;  %v4590_v28 = vand.u32 4294901760, %v3758_v39 }
  0xb6   : > { %757 = vmatmul.mubr.f32.vlgmr.msra.gmra.mrb[2].mxu0 %v4699_v17  ;;  %2678 = vmatpush3.bf16.msra.mxu1 %v4703_v53 }
  0xb7   : > { %2682 = vmatpush3.bf16.msra.mxu0 %v3619_v34  ;;  %1031 = vmatprep.mubr.f32.mxu0 %v4701_v59  ;;  %v1378_v34 = vand.u32 4294901760, %v1377_v55  ;;  %v3835_v55 = vsub.f32 %v3758_v39, %v4590_v28  ;;  %v3854_v28 = vld [vmem:[#allocation2 + $0x1c0] sm:$0xff] }
  0xb8   : > { %2684 = vmatprep.subr.bf16.mxu0 %v3625_v24  ;;  %2712 = vmatprep.subr.bf16.mxu1 %v3342_v19  ;;  %v4706_v19 = vand.u32 4294901760, %v4699_v17  ;;  %v3812_v24 = vsub.f32 %v3745_v43, %v4707_v26  ;;  %v4710_v17 = vand.u32 4294901760, %v3754_v63  ;;  %v4711_v26 = vand.u32 4294901760, %v3756_v3  ;;  %4718 = vst [vmem:[#allocation27_spill] sm:$0xff] %v3854_v28  ;;  %v3867_v39 = vld [vmem:[#allocation2 + $0x140] sm:$0xff] }
  0xb9   : > { %4713 = vst [vmem:[#allocation23_spill] sm:$0xff] %v3835_v55  ;;  %4721 = vst [vmem:[#allocation30_spill] sm:$0xff] %v3867_v39 }
  0xba   : > { %865 = vmatmul.mubr.f32.vlgmr.msra.gmra.mrb[2].mxu1 %v4706_v19  ;;  %v3825_v19 = vsub.f32 %v3754_v63, %v4710_v17  ;;  %v3830_v7 = vsub.f32 %v3756_v3, %v4711_v26  ;;  %v4716_v17 = vand.u32 4294901760, %v3770_v52 }
  0xbb   : > { %2686 = vmatpush3.bf16.msra.mxu0 %v3631_v57  ;;  %v3818_v57 = vld [vmem:[#allocation2 + $0x138] sm:$0xff]  ;;  %2714 = vmatpush3.bf16.msra.mxu1 %v3346_v25  ;;  %v3842_v25 = vsub.f32 %v3750_v16, %v4591_v49  ;;  %v3863_v49 = vsub.f32 %v3780_v35, %v4595_v15  ;;  %v3882_v35 = vld [vmem:[#allocation2 + $0x148] sm:$0xff]  ;;  %v4729_v15 = vcombine.high %v4694_v48, %v4694_v48 }
  0xbc   : > { %4709 = vst [vmem:[#allocation19_spill] sm:$0xff] %v3818_v57  ;;  %2688 = vmatprep.subr.bf16.mxu0 %v3637_v40  ;;  %4712 = vst [vmem:[#allocation22_spill] sm:$0xff] %v3830_v7  ;;  %2716 = vmatprep.subr.bf16.mxu1 %v3350_v27  ;;  %v3847_v40 = vsub.f32 %v3752_v6, %v4592_v9  ;;  %v3852_v26 = vsub.f32 %v3770_v52, %v4716_v17  ;;  %v3856_v27 = vld [vmem:[#allocation2 + $0x1c8] sm:$0xff]  ;;  %v4722_v17 = vand.u32 4294901760, %v3774_v60  ;;  %v3884_v9 = vld [vmem:[#allocation2 + $0x1d0] sm:$0xff] }
  0xbd   : > { %1135 = vmatprep.mubr.f32.mxu1 %v4701_v59  ;;  %4714 = vst [vmem:[#allocation24_spill] sm:$0xff] %v3842_v25  ;;  %4719 = vst [vmem:[#allocation28_spill] sm:$0xff] %v3856_v27  ;;  %v3858_v59 = vpack.c.bf16 %v1378_v34, %v1371_v21  ;;  %v4724_v34 = vand.u32 4294901760, %v3776_v2  ;;  %v4732_v63 = vand.u32 4294901760, %v3818_v57  ;;  %v4736_v48 = vand.u32 4294901760, %v3856_v27  ;;  %v3990_v25 = vld [vmem:[#allocation2 + $0x170] sm:$0xff] }
  0xbe   : > { %4715 = vst [vmem:[#allocation25_spill] sm:$0xff] %v3847_v40  ;;  %4717 = vst [vmem:[#allocation26_spill] sm:$0xff] %v3852_v26  ;;  %v3873_v52 = vsub.f32 %v3774_v60, %v4722_v17  ;;  %v4731_v17 = vand.u32 4294901760, %v3816_v38  ;;  %v3988_v40 = vld [vmem:[#allocation2 + $0x1f8] sm:$0xff] }
  0xbf   : > { %4720 = vst [vmem:[#allocation29_spill] sm:$0xff] %v3858_v59  ;;  %2690 = vmatpush3.bf16.msra.mxu0 %v3643_v29  ;;  %v3878_v21 = vsub.f32 %v3776_v2, %v4724_v34  ;;  %4726 = vst [vmem:[#allocation33_spill] sm:$0xff] %v3882_v35  ;;  %2718 = vmatpush3.bf16.msra.mxu1 %v3357_v32  ;;  %v4728_v34 = vld [vmem:[#allocation11_spill] sm:$0xff]  ;;  %v4737_v32 = vand.u32 4294901760, %v3812_v24 }
  0xc0   : > { %4723 = vst [vmem:[#allocation31_spill] sm:$0xff] %v3873_v52  ;;  %4727 = vst [vmem:[#allocation34_spill] sm:$0xff] %v3884_v9  ;;  %2692 = vmatprep.subr.bf16.mxu0 %v3650_v1  ;;  %v3895_v59 = vrot.slane %v4729_v15, %v4728_v34  ;;  %2720 = vmatprep.subr.bf16.mxu1 %v3373_v45  ;;  %v3905_v3 = vsub.f32 %v3816_v38, %v4731_v17  ;;  %v4733_v1 = vand.u32 4294901760, %v3798_v8  ;;  %v3968_v38 = vld [vmem:[#allocation2 + $0x160] sm:$0xff] }
  0xc1   : > { %4725 = vst [vmem:[#allocation32_spill] sm:$0xff] %v3878_v21  ;;  %v3910_v15 = vsub.f32 %v3818_v57, %v4732_v63  ;;  %v4734_v17 = vand.u32 4294901760, %v3807_v20  ;;  %v3926_v63 = vld [vmem:[#allocation2 + $0x1d8] sm:$0xff]  ;;  %v4735_v34 = vand.u32 4294901760, %v3854_v28  ;;  %v3966_v57 = vld [vmem:[#allocation2 + $0x1e8] sm:$0xff]  ;;  %4743 = vst [vmem:[#allocation38_spill] sm:$0xff] %v3968_v38 }
  0xc2   : > { %4730 = vst [vmem:[#allocation11_spill] sm:$0xff] %v3895_v59  ;;  %v3919_v47 = vsub.f32 %v3798_v8, %v4733_v1  ;;  %v275_v45 = vcombine.high %v3895_v59, %v3895_v59  ;;  %v3946_v59 = vsub.f32 %v3812_v24, %v4737_v32  ;;  %4742 = vst [vmem:[#allocation37_spill] sm:$0xff] %v3966_v57  ;;  %v3970_v21 = vld [vmem:[#allocation2 + $0x168] sm:$0xff] }
  0xc3   : > { %2694 = vmatpush3.bf16.msra.mxu0 %v3656_v14  ;;  %v3924_v29 = vsub.f32 %v3807_v20, %v4734_v17  ;;  %2722 = vmatpush3.bf16.msra.mxu1 %v3381_v51  ;;  %v3936_v1 = vsub.f32 %v3854_v28, %v4735_v34  ;;  %v3941_v17 = vsub.f32 %v3856_v27, %v4736_v48  ;;  %v3950_v51 = vld [vmem:[#allocation2 + $0x158] sm:$0xff]  ;;  %v3952_v14 = vld [vmem:[#allocation2 + $0x1e0] sm:$0xff]  ;;  %v4739_v34 = vand.u32 4294901760, %v3825_v19 }
  0xc4   : > { %2696 = vmatprep.subr.bf16.mxu0 %v3662_v46  ;;  %4738 = vst [vmem:[#allocation35_spill] sm:$0xff] %v3946_v59  ;;  %v3948_v46 = vld [vmem:[#allocation2 + $0x150] sm:$0xff]  ;;  %2724 = vmatprep.subr.bf16.mxu1 %v3403_v4  ;;  %v4741_v48 = vand.u32 4294901760, %v3867_v39  ;;  %4744 = vst [vmem:[#allocation39_spill] sm:$0xff] %v3970_v21  ;;  %v3972_v52 = vand.u32 4294901760, %v275_v45  ;;  %v4746_v4 = vand.u32 4294901760, %v3882_v35 }
  0xc5   : > { %v3958_v28 = vsub.f32 %v3825_v19, %v4739_v34  ;;  %v3986_v59 = vld [vmem:[#allocation2 + $0x1f0] sm:$0xff]  ;;  %4751 = vst [vmem:[#allocation44_spill] sm:$0xff] %v3988_v40  ;;  %4752 = vst [vmem:[#allocation45_spill] sm:$0xff] %v3990_v25 }
  0xc6   : > { %v3963_v27 = vsub.f32 %v3867_v39, %v4741_v48  ;;  %4745 = vst [vmem:[#allocation40_spill] sm:$0xff] %v3972_v52  ;;  %v3977_v34 = vsub.f32 %v3882_v35, %v4746_v4  ;;  %v4748_v39 = vand.u32 4294901760, %v3884_v9  ;;  %4750 = vst [vmem:[#allocation43_spill] sm:$0xff] %v3986_v59  ;;  %v3997_v48 = vsub.f32 %v275_v45, %v3972_v52  ;;  %v4005_v4 = vld [vmem:[#allocation2 + $0x178] sm:$0xff] }
  0xc7   : > { %4740 = vst [vmem:[#allocation36_spill] sm:$0xff] %v3958_v28  ;;  %2698 = vmatpush3.bf16.msra.mxu0 %v3668_v23  ;;  %2726 = vmatpush3.bf16.msra.mxu1 %v3419_v22  ;;  %v4755_v22 = vand.u32 4294901760, %v3950_v51 }
  0xc8   : > { %4747 = vst [vmem:[#allocation41_spill] sm:$0xff] %v3977_v34  ;;  %v3984_v32 = vsub.f32 %v3884_v9, %v4748_v39  ;;  %2700 = vmatprep.subr.bf16.mxu0 %v3674_v37  ;;  %2728 = vmatprep.subr.bf16.mxu1 %v3432_v54  ;;  %v4753_v39 = vand.u32 4294901760, %v3926_v63  ;;  %v4754_v54 = vand.u32 4294901760, %v3948_v46 }
  0xc9   : > { %v4029_v37 = vsub.f32 %v3950_v51, %v4755_v22  ;;  %v4758_v22 = vand.u32 4294901760, %v3968_v38 }
  0xca   : > { %4749 = vst [vmem:[#allocation42_spill] sm:$0xff] %v3984_v32  ;;  %v4015_v9 = vsub.f32 %v3926_v63, %v4753_v39  ;;  %v4024_v45 = vsub.f32 %v3948_v46, %v4754_v54  ;;  %v4756_v39 = vand.u32 4294901760, %v3952_v14 }
  0xcb   : > { %2702 = vmatpush3.bf16.msra.mxu0 %v3680_v30  ;;  %2730 = vmatpush3.bf16.msra.mxu1 %v3449_v12  ;;  %v4757_v30 = vand.u32 4294901760, %v3966_v57  ;;  %v4048_v28 = vsub.f32 %v3968_v38, %v4758_v22  ;;  %v4760_v12 = vand.u32 4294901760, %v3986_v59  ;;  %v4762_v22 = vand.u32 4294901760, %v3990_v25 }
  0xcc   : > { %v4034_v43 = vsub.f32 %v3952_v14, %v4756_v39  ;;  %2704 = vmatprep.subr.bf16.mxu0 %v3686_v44  ;;  %v4759_v39 = vand.u32 4294901760, %v3970_v21  ;;  %2732 = vmatprep.subr.bf16.mxu1 %v4689_v42 }
  0xcd   : > { %v4042_v54 = vsub.f32 %v3966_v57, %v4757_v30  ;;  %v4059_v44 = vsub.f32 %v3986_v59, %v4760_v12  ;;  %v4761_v30 = vand.u32 4294901760, %v3988_v40  ;;  %v4069_v38 = vsub.f32 %v3990_v25, %v4762_v22 }
  0xce   : > { %v4053_v23 = vsub.f32 %v3970_v21, %v4759_v39  ;;  %v4763_v39 = vand.u32 4294901760, %v3997_v48  ;;  %v4768_v59 = vand.u32 4294901760, %v3750_v16  ;;  %v4775_v25 = vand.u32 4294901760, %v3807_v20 }
  0xcf   : > { %v4064_v35 = vsub.f32 %v3988_v40, %v4761_v30  ;;  %2706 = vmatpush3.bf16.msra.mxu0 %v3692_v50  ;;  %v4764_v40 = vand.u32 4294901760, %v4005_v4  ;;  %2734 = vmatpush3.bf16.msra.mxu1 %v4690_v61  ;;  %v4766_v61 = vand.u32 4294901760, %v3731_v10  ;;  %v4769_v50 = vand.u32 4294901760, %v3752_v6 }
  0xd0   : > { %v1241_v21 = vsub.f32 %v3997_v48, %v4763_v39  ;;  %2708 = vmatprep.subr.bf16.mxu0 %v3697_v58  ;;  %2736 = vmatprep.subr.bf16.mxu1 %v4691_v11  ;;  %v4765_v58 = vand.u32 4294901760, %v3729_v13  ;;  %v4771_v11 = vand.u32 4294901760, %v3774_v60  ;;  %v4774_v39 = vand.u32 4294901760, %v3798_v8 }
  0xd1   : > { %v4083_v22 = vsub.f32 %v4005_v4, %v4764_v40  ;;  %v4107_v30 = vpack.c.bf16 %v4769_v50, %v4768_v59  ;;  %v4780_v50 = vand.u32 4294901760, %v3830_v7 }
  0xd2   : > { %v1242_v40 = vand.u32 4294901760, %v1241_v21  ;;  %v4101_v12 = vpack.c.bf16 %v4766_v61, %v4765_v58  ;;  %v4772_v21 = vand.u32 4294901760, %v3776_v2  ;;  %v4119_v42 = vpack.c.bf16 %v4775_v25, %v4774_v39 }
  0xd3   : > { %4770 = vst [vmem:[#allocation47_spill] sm:$0xff] %v4107_v30  ;;  %2710 = vmatpush3.bf16.msra.mxu0 %v3699_v41  ;;  %v4777_v58 = vand.u32 4294901760, %v3812_v24  ;;  %v4778_v61 = vand.u32 4294901760, %v3825_v19  ;;  %v4781_v30 = vand.u32 4294901760, %v3835_v55  ;;  %v4786_v41 = vand.u32 4294901760, %v3905_v3  ;;  %2738 = vmatpush3.bf16.msra.mxu1 %v4692_v33 }
  0xd4   : > { %4767 = vst [vmem:[#allocation46_spill] sm:$0xff] %v4101_v12  ;;  %v4113_v57 = vpack.c.bf16 %v4772_v21, %v4771_v11  ;;  %4776 = vst [vmem:[#allocation49_spill] sm:$0xff] %v4119_v42  ;;  %v4783_v21 = vand.u32 4294901760, %v3852_v26  ;;  %v4787_v39 = vand.u32 4294901760, %v3910_v15  ;;  %2744 = vmatprep.subr.bf16.mxu0 %v3761_v18  ;;  %2740 = vmatprep.subr.bf16.mxu1 %v4695_v0  ;;  %v4798_v33 = vand.u32 4294901760, %v4024_v45  ;;  %v4826_v12 = vld [vmem:[#allocation36_spill] sm:$0xff] }
  0xd5   : > { %v4126_v59 = vpack.c.bf16 %v4778_v61, %v4777_v58  ;;  %v4132_v11 = vpack.c.bf16 %v4781_v30, %v4780_v50  ;;  %v4789_v30 = vand.u32 4294901760, %v3936_v1  ;;  %v4790_v61 = vand.u32 4294901760, %v3941_v17 }
  0xd6   : > { %4773 = vst [vmem:[#allocation48_spill] sm:$0xff] %v4113_v57  ;;  %v4784_v57 = vand.u32 4294901760, %v3863_v49  ;;  %v4144_v42 = vpack.c.bf16 %v4787_v39, %v4786_v41  ;;  %v4795_v41 = vand.u32 4294901760, %v3984_v32  ;;  %v4796_v39 = vand.u32 4294901760, %v4015_v9  ;;  %1033 = vmatmul.mubr.f32.vlgmr.msra.gmra.mrb[4].mxu0 %v3559_v62 }
  0xd7   : > { %4779 = vst [vmem:[#allocation50_spill] sm:$0xff] %v4126_v59  ;;  %4782 = vst [vmem:[#allocation51_spill] sm:$0xff] %v4132_v11  ;;  %v4153_v50 = vpack.c.bf16 %v4790_v61, %v4789_v30  ;;  %v4799_v58 = vand.u32 4294901760, %v4029_v37  ;;  %v4801_v61 = vand.u32 4294901760, %v4034_v43  ;;  %v4807_v0 = vand.u32 4294901760, %v4059_v44  ;;  %2746 = vmatpush3.bf16.msra.mxu0 %v3784_v36  ;;  %1243 = vmatprep.mubr.f32.mxu0 %v1242_v40  ;;  %v4825_v11 = vld [vmem:[#allocation35_spill] sm:$0xff] }
  0xd8   : > { %v4138_v25 = vpack.c.bf16 %v4784_v57, %v4783_v21  ;;  %4788 = vst [vmem:[#allocation53_spill] sm:$0xff] %v4144_v42  ;;  %v4792_v57 = vand.u32 4294901760, %v3963_v27  ;;  %v4793_v21 = vand.u32 4294901760, %v3977_v34  ;;  %v4165_v42 = vpack.c.bf16 %v4796_v39, %v4795_v41  ;;  %2748 = vmatprep.subr.bf16.mxu0 %v3790_v5  ;;  %2742 = vmatpush3.bf16.msra.mxu1 %v4703_v53  ;;  %v4827_v40 = vld [vmem:[#allocation29_spill] sm:$0xff]  ;;  %v4828_v5 = vld [vmem:[#allocation31_spill] sm:$0xff]  ;;  %v4830_v53 = vld [vmem:[#allocation32_spill] sm:$0xff] }
  0xd9   : > { %4791 = vst [vmem:[#allocation54_spill] sm:$0xff] %v4153_v50  ;;  %v4172_v30 = vpack.c.bf16 %v4799_v58, %v4798_v33  ;;  %v4802_v50 = vand.u32 4294901760, %v4042_v54  ;;  %v4808_v39 = vand.u32 4294901760, %v4064_v35  ;;  %v4810_v58 = vand.u32 4294901760, %v3739_v31  ;;  %2776 = vmatprep.subr.bf16.mxu1 %v4827_v40 }
  0xda   : > { %4785 = vst [vmem:[#allocation52_spill] sm:$0xff] %v4138_v25  ;;  %v4159_v25 = vpack.c.bf16 %v4793_v21, %v4792_v57  ;;  %4797 = vst [vmem:[#allocation56_spill] sm:$0xff] %v4165_v42  ;;  %v4804_v21 = vand.u32 4294901760, %v4048_v28  ;;  %v4811_v33 = vand.u32 4294901760, %v3743_v56  ;;  %v4816_v56 = vand.u32 4294901760, %v3835_v55 }
  0xdb   : > { %4800 = vst [vmem:[#allocation57_spill] sm:$0xff] %v4172_v30  ;;  %v4178_v57 = vpack.c.bf16 %v4802_v50, %v4801_v61  ;;  %v4190_v42 = vpack.c.bf16 %v4808_v39, %v4807_v0  ;;  %v4812_v61 = vand.u32 4294901760, %v4069_v38  ;;  %v1280_v0 = vand.u32 4294901760, %v3924_v29  ;;  %v4821_v29 = vld [vmem:[#allocation24_spill] sm:$0xff]  ;;  %1137 = vmatmul.mubr.f32.vlgmr.msra.gmra.mrb[4].mxu1 %v3559_v62 }
  0xdc   : > { %4794 = vst [vmem:[#allocation55_spill] sm:$0xff] %v4159_v25  ;;  %v4805_v25 = vand.u32 4294901760, %v4053_v23  ;;  %v4197_v50 = vpack.c.bf16 %v4811_v33, %v4810_v58  ;;  %v4815_v39 = vand.u32 4294901760, %v3830_v7  ;;  %v1293_v58 = vsub.f32 %v3835_v55, %v4816_v56  ;;  %1479 = vmatprep.mubr.f32.mxu1 %v3972_v52 }
  0xdd   : > { %4803 = vst [vmem:[#allocation58_spill] sm:$0xff] %v4178_v57  ;;  %4809 = vst [vmem:[#allocation60_spill] sm:$0xff] %v4190_v42  ;;  %v4813_v57 = vand.u32 4294901760, %v4083_v22  ;;  %v4822_v42 = vand.u32 4294901760, %v4821_v29  ;;  %v1399_v59 = vand.u32 4294901760, %v4825_v11  ;;  %v1406_v56 = vand.u32 4294901760, %v4826_v12 }
  0xde   : > { %v4184_v41 = vpack.c.bf16 %v4805_v25, %v4804_v21  ;;  %v1273_v21 = vand.u32 4294901760, %v3919_v47  ;;  %v1286_v31 = vsub.f32 %v3830_v7, %v4815_v39  ;;  %v4829_v36 = vand.u32 4294901760, %v4828_v5  ;;  %v4836_v11 = vld [vmem:[#allocation14_spill] sm:$0xff]  ;;  %2750 = vmatpush3.bf16.msra.mxu0 %v4197_v50  ;;  %v4839_v5 = vld [vmem:[#allocation15_spill] sm:$0xff] }
  0xdf   : > { %v4203_v25 = vpack.c.bf16 %v4813_v57, %v4812_v61  ;;  %v4817_v57 = vld [vmem:[#allocation18_spill] sm:$0xff]  ;;  %v4819_v61 = vld [vmem:[#allocation12_spill] sm:$0xff]  ;;  %v4831_v55 = vand.u32 4294901760, %v4830_v53  ;;  %v4837_v29 = vand.u32 4294901760, %v4836_v11  ;;  %v1294_v7 = vand.u32 4294901760, %v1293_v58 }
  0xe0   : > { %4806 = vst [vmem:[#allocation59_spill] sm:$0xff] %v4184_v41  ;;  %v4818_v33 = vand.u32 4294901760, %v4817_v57  ;;  %v4823_v41 = vld [vmem:[#allocation25_spill] sm:$0xff]  ;;  %v4845_v11 = vand.u32 4294901760, %v3910_v15  ;;  %v4858_v52 = vand.u32 4294901760, %v3977_v34 }
  0xe1   : > { %4814 = vst [vmem:[#allocation61_spill] sm:$0xff] %v4203_v25  ;;  %v4820_v25 = vand.u32 4294901760, %v4819_v61  ;;  %v4824_v30 = vand.u32 4294901760, %v4823_v41  ;;  %v2779_v57 = vpack.c.bf16 %v4831_v55, %v4829_v36  ;;  %v4832_v61 = vand.u32 4294901760, %v3852_v26  ;;  %v4841_v55 = vld [vmem:[#allocation17_spill] sm:$0xff] }
  0xe2   : > { %v4840_v36 = vand.u32 4294901760, %v4839_v5  ;;  %v4842_v40 = vand.u32 4294901760, %v4841_v55  ;;  %v1307_v62 = vsub.f32 %v3910_v15, %v4845_v11 }
  0xe3   : > { %v4220_v47 = vpack.c.bf16 %v4820_v25, %v4818_v33  ;;  %v2777_v39 = vpack.c.bf16 %v4824_v30, %v4822_v42  ;;  %v1412_v25 = vsub.f32 %v3852_v26, %v4832_v61  ;;  %v4833_v33 = vand.u32 4294901760, %v3863_v49  ;;  %v4834_v42 = vld [vmem:[#allocation13_spill] sm:$0xff] }
  0xe4   : > { %v4835_v30 = vand.u32 4294901760, %v4834_v42  ;;  %v4251_v53 = vpack.c.bf16 %v4842_v40, %v4840_v36  ;;  %v2781_v61 = vpack.c.bf16 %v1280_v0, %v1273_v21  ;;  %v1287_v26 = vand.u32 4294901760, %v1286_v31 }
  0xe5   : > { %v1419_v41 = vsub.f32 %v3863_v49, %v4833_v33  ;;  %2752 = vmatprep.subr.bf16.mxu0 %v4220_v47  ;;  %2778 = vmatpush3.bf16.msra.mxu1 %v2777_v39  ;;  %v2783_v33 = vpack.c.bf16 %v1406_v56, %v1399_v59  ;;  %v4844_v42 = vand.u32 4294901760, %v3905_v3  ;;  %v4846_v36 = vand.u32 4294901760, %v3936_v1  ;;  %v4848_v59 = vld [vmem:[#allocation20_spill] sm:$0xff]  ;;  %v4850_v39 = vld [vmem:[#allocation19_spill] sm:$0xff] }
  0xe6   : > { %v4243_v12 = vpack.c.bf16 %v4837_v29, %v4835_v30  ;;  %4843 = vst [vmem:[#allocation12_spill] sm:$0xff] %v4251_v53  ;;  %2780 = vmatprep.subr.bf16.mxu1 %v2779_v57  ;;  %v1413_v29 = vand.u32 4294901760, %v1412_v25  ;;  %v4847_v0 = vand.u32 4294901760, %v3941_v17  ;;  %v4849_v58 = vand.u32 4294901760, %v4848_v59  ;;  %v4852_v57 = vld [vmem:[#allocation27_spill] sm:$0xff] }
  0xe7   : > { %v1300_v30 = vsub.f32 %v3905_v3, %v4844_v42  ;;  %v1420_v5 = vand.u32 4294901760, %v1419_v41  ;;  %v1426_v21 = vsub.f32 %v3936_v1, %v4846_v36  ;;  %v4851_v56 = vand.u32 4294901760, %v4850_v39  ;;  %v4854_v41 = vld [vmem:[#allocation28_spill] sm:$0xff] }
  0xe8   : > { %4838 = vst [vmem:[#allocation18_spill] sm:$0xff] %v4243_v12  ;;  %v1433_v31 = vsub.f32 %v3941_v17, %v4847_v0  ;;  %2754 = vmatpush3.bf16.msra.mxu0 %v4243_v12  ;;  %v4853_v25 = vand.u32 4294901760, %v4852_v57  ;;  %v4855_v40 = vand.u32 4294901760, %v4854_v41  ;;  %v2785_v11 = vpack.c.bf16 %v1294_v7, %v1287_v26 }
  0xe9   : > { %v4271_v55 = vpack.c.bf16 %v4851_v56, %v4849_v58  ;;  %v4857_v36 = vand.u32 4294901760, %v3963_v27  ;;  %v1321_v59 = vsub.f32 %v3977_v34, %v4858_v52  ;;  %2756 = vmatprep.subr.bf16.mxu0 %v4251_v53  ;;  %2782 = vmatpush3.bf16.msra.mxu1 %v2781_v61  ;;  %v1301_v58 = vand.u32 4294901760, %v1300_v30  ;;  %v4863_v52 = vld [vmem:[#allocation33_spill] sm:$0xff]  ;;  %v4865_v61 = vld [vmem:[#allocation11_spill] sm:$0xff] }
  0xea   : > { %v4278_v42 = vpack.c.bf16 %v4855_v40, %v4853_v25  ;;  %v1308_v39 = vand.u32 4294901760, %v1307_v62  ;;  %v4859_v56 = vand.u32 4294901760, %v3984_v32  ;;  %v4860_v25 = vand.u32 4294901760, %v4015_v9  ;;  %2784 = vmatprep.subr.bf16.mxu1 %v2783_v33 }
  0xeb   : > { %v1314_v0 = vsub.f32 %v3963_v27, %v4857_v36  ;;  %v2787_v26 = vpack.c.bf16 %v1420_v5, %v1413_v29  ;;  %v1427_v41 = vand.u32 4294901760, %v1426_v21  ;;  %v1434_v40 = vand.u32 4294901760, %v1433_v31  ;;  %v4861_v36 = vld [vmem:[#allocation30_spill] sm:$0xff] }
  0xec   : > { %4856 = vst [vmem:[#allocation24_spill] sm:$0xff] %v4278_v42  ;;  %v1440_v57 = vsub.f32 %v3984_v32, %v4859_v56  ;;  %v1447_v7 = vsub.f32 %v4015_v9, %v4860_v25  ;;  %v4862_v12 = vand.u32 4294901760, %v4861_v36  ;;  %v4864_v34 = vand.u32 4294901760, %v4863_v52  ;;  %2758 = vmatpush3.bf16.msra.mxu0 %v4271_v55 }
  0xed   : > { %v4300_v30 = vand.u32 4294901760, %v4865_v61  ;;  %v1315_v62 = vand.u32 4294901760, %v1314_v0  ;;  %v1322_v56 = vand.u32 4294901760, %v1321_v59  ;;  %v4866_v32 = vand.u32 4294901760, %v4024_v45  ;;  %2760 = vmatprep.subr.bf16.mxu0 %v4278_v42  ;;  %2786 = vmatpush3.bf16.msra.mxu1 %v2785_v11 }
  0xee   : > { %v4297_v53 = vpack.c.bf16 %v4864_v34, %v4862_v12  ;;  %v4867_v29 = vand.u32 4294901760, %v4029_v37  ;;  %v4868_v34 = vld [vmem:[#allocation34_spill] sm:$0xff]  ;;  %v4870_v21 = vand.u32 4294901760, %v3926_v63  ;;  %v2789_v25 = vpack.c.bf16 %v1308_v39, %v1301_v58  ;;  %2788 = vmatprep.subr.bf16.mxu1 %v2787_v26 }
  0xef   : > { %v1328_v33 = vsub.f32 %v4024_v45, %v4866_v32  ;;  %v4869_v12 = vand.u32 4294901760, %v4868_v34  ;;  %v1441_v0 = vand.u32 4294901760, %v1440_v57  ;;  %v1448_v59 = vand.u32 4294901760, %v1447_v7  ;;  %v4876_v57 = vld [vmem:[#allocation37_spill] sm:$0xff] }
  0xf0   : > { %v1335_v5 = vsub.f32 %v4029_v37, %v4867_v29  ;;  %v2791_v36 = vpack.c.bf16 %v1434_v40, %v1427_v41  ;;  %v4871_v32 = vand.u32 4294901760, %v4034_v43  ;;  %v4872_v29 = vand.u32 4294901760, %v4042_v54  ;;  %2762 = vmatpush3.bf16.msra.mxu0 %v4297_v53 }
  0xf1   : > { %v4314_v31 = vpack.c.bf16 %v4870_v21, %v4869_v12  ;;  %v4873_v11 = vand.u32 4294901760, %v3948_v46  ;;  %v4874_v34 = vand.u32 4294901760, %v3950_v51  ;;  %v4330_v58 = vsub.f32 %v4865_v61, %v4300_v30  ;;  %2790 = vmatpush3.bf16.msra.mxu1 %v2789_v25  ;;  %v4882_v25 = vld [vmem:[#allocation38_spill] sm:$0xff] }
  0xf2   : > { %v1454_v52 = vsub.f32 %v4034_v43, %v4871_v32  ;;  %v1461_v42 = vsub.f32 %v4042_v54, %v4872_v29  ;;  %v4875_v39 = vand.u32 4294901760, %v3952_v14  ;;  %v4877_v7 = vand.u32 4294901760, %v4876_v57  ;;  %2792 = vmatprep.subr.bf16.mxu1 %v2791_v36  ;;  %v4886_v36 = vld [vmem:[#allocation43_spill] sm:$0xff] }
  0xf3   : > { %v4326_v63 = vpack.c.bf16 %v4874_v34, %v4873_v11  ;;  %v2793_v41 = vpack.c.bf16 %v1322_v56, %v1315_v62  ;;  %v1329_v40 = vand.u32 4294901760, %v1328_v33  ;;  %v1336_v12 = vand.u32 4294901760, %v1335_v5  ;;  %2764 = vmatprep.subr.bf16.mxu0 %v4314_v31 }
  0xf4   : > { %v4337_v26 = vpack.c.bf16 %v4877_v7, %v4875_v39  ;;  %v2795_v46 = vpack.c.bf16 %v1448_v59, %v1441_v0  ;;  %v4878_v51 = vand.u32 4294901760, %v4048_v28  ;;  %v4879_v21 = vand.u32 4294901760, %v4053_v23  ;;  %v4884_v59 = vld [vmem:[#allocation39_spill] sm:$0xff] }
  0xf5   : > { %v1455_v14 = vand.u32 4294901760, %v1454_v52  ;;  %v1462_v29 = vand.u32 4294901760, %v1461_v42  ;;  %v4880_v11 = vand.u32 4294901760, %v4059_v44  ;;  %v4881_v56 = vand.u32 4294901760, %v4064_v35  ;;  %2766 = vmatpush3.bf16.msra.mxu0 %v4326_v63  ;;  %v4888_v52 = vld [vmem:[#allocation44_spill] sm:$0xff]  ;;  %2794 = vmatpush3.bf16.msra.mxu1 %v2793_v41  ;;  %v4892_v41 = vld [vmem:[#allocation45_spill] sm:$0xff] }
  0xf6   : > { %v1342_v61 = vsub.f32 %v4048_v28, %v4878_v51  ;;  %v1349_v32 = vsub.f32 %v4053_v23, %v4879_v21  ;;  %v1246_v5 = vand.u32 4294901760, %v4330_v58  ;;  %v4883_v0 = vand.u32 4294901760, %v4882_v25  ;;  %2768 = vmatprep.subr.bf16.mxu0 %v4337_v26  ;;  %2796 = vmatprep.subr.bf16.mxu1 %v2795_v46 }
  0xf7   : > { %v1468_v62 = vsub.f32 %v4059_v44, %v4880_v11  ;;  %v1475_v33 = vsub.f32 %v4064_v35, %v4881_v56  ;;  %v4885_v34 = vand.u32 4294901760, %v4884_v59  ;;  %v4887_v42 = vand.u32 4294901760, %v4886_v36 }
  0xf8   : > { %v4889_v57 = vand.u32 4294901760, %v4888_v52  ;;  %v2797_v51 = vpack.c.bf16 %v1336_v12, %v1329_v40  ;;  %v1343_v21 = vand.u32 4294901760, %v1342_v61  ;;  %v1350_v11 = vand.u32 4294901760, %v1349_v32 }
  0xf9   : > { %v4358_v39 = vpack.c.bf16 %v4885_v34, %v4883_v0  ;;  %v4890_v56 = vand.u32 4294901760, %v4069_v38  ;;  %v4891_v59 = vand.u32 4294901760, %v4083_v22  ;;  %v2799_v34 = vpack.c.bf16 %v1462_v29, %v1455_v14 }
  0xfa   : > { %v4364_v7 = vpack.c.bf16 %v4889_v57, %v4887_v42  ;;  %v1469_v36 = vand.u32 4294901760, %v1468_v62  ;;  %v1476_v52 = vand.u32 4294901760, %v1475_v33  ;;  %v1247_v40 = vsub.f32 %v4330_v58, %v1246_v5  ;;  %2798 = vmatpush3.bf16.msra.mxu1 %v2797_v51 }
  0xfb   : > { %v1356_v25 = vsub.f32 %v4069_v38, %v4890_v56  ;;  %v1363_v0 = vsub.f32 %v4083_v22, %v4891_v59  ;;  %2770 = vmatpush3.bf16.msra.mxu0 %v4358_v39  ;;  %v4893_v12 = vand.u32 4294901760, %v4892_v41  ;;  %v4894_v61 = vand.u32 4294901760, %v4005_v4  ;;  %2800 = vmatprep.subr.bf16.mxu1 %v2799_v34  ;;  %v4921_v34 = vld [vmem:[#allocation60_spill] sm:$0xff] }
  0xfc   : > { %2772 = vmatprep.subr.bf16.mxu0 %v4364_v7  ;;  %v2807_v46 = vpack.c.bf16 %v3731_v10, %v3729_v13  ;;  %v2801_v14 = vpack.c.bf16 %v1350_v11, %v1343_v21  ;;  %v2803_v33 = vpack.c.bf16 %v1476_v52, %v1469_v36  ;;  %v1248_v42 = vand.u32 4294901760, %v1247_v40  ;;  %v4898_v21 = vld [vmem:[#allocation26_spill] sm:$0xff]  ;;  %v4922_v36 = vld [vmem:[#allocation61_spill] sm:$0xff] }
  0xfd   : > { %v4381_v32 = vpack.c.bf16 %v4894_v61, %v4893_v12  ;;  %v1357_v29 = vand.u32 4294901760, %v1356_v25  ;;  %v1364_v62 = vand.u32 4294901760, %v1363_v0  ;;  %v2809_v57 = vpack.c.bf16 %v3752_v6, %v3750_v16  ;;  %v4895_v16 = vld [vmem:[#allocation22_spill] sm:$0xff]  ;;  %v4896_v6 = vld [vmem:[#allocation23_spill] sm:$0xff]  ;;  %v4904_v0 = vld [vmem:[#allocation12_spill] sm:$0xff] }
  0xfe   : > { %2802 = vmatpush3.bf16.msra.mxu1 %v2801_v14  ;;  %v2811_v4 = vpack.c.bf16 %v3776_v2, %v3774_v60  ;;  %v2813_v13 = vpack.c.bf16 %v3807_v20, %v3798_v8  ;;  %v2815_v10 = vpack.c.bf16 %v3825_v19, %v3812_v24  ;;  %v2817_v60 = vpack.c.bf16 %v4896_v6, %v4895_v16  ;;  %v4897_v2 = vld [vmem:[#allocation16_spill] sm:$0xff]  ;;  %v4899_v20 = vld [vmem:[#allocation21_spill] sm:$0xff]  ;;  %v4902_v25 = vld [vmem:[#allocation18_spill] sm:$0xff] }
  0xff   : > { %2774 = vmatpush3.bf16.msra.mxu0 %v4381_v32  ;;  %v2805_v51 = vpack.c.bf16 %v1364_v62, %v1357_v29  ;;  %2804 = vmatprep.subr.bf16.mxu1 %v2803_v33  ;;  %v2819_v8 = vpack.c.bf16 %v3863_v49, %v4898_v21  ;;  %v4900_v11 = vand.u32 4294901760, %v3997_v48  ;;  %v2821_v24 = vpack.c.bf16 %v3910_v15, %v3905_v3  ;;  %v4901_v49 = vld [vmem:[#allocation41_spill] sm:$0xff] }
 0x100   : > { %2808 = vmatprep.subr.bf16.mxu0 %v2807_v46  ;;  %v2823_v19 = vpack.c.bf16 %v3941_v17, %v3936_v1  ;;  %v2825_v56 = vpack.c.bf16 %v4901_v49, %v3963_v27  ;;  %v2829_v3 = vpack.c.bf16 %v4029_v37, %v4024_v45  ;;  %v2831_v15 = vpack.c.bf16 %v4042_v54, %v4034_v43  ;;  %v4905_v1 = vld [vmem:[#allocation24_spill] sm:$0xff]  ;;  %v4906_v43 = vld [vmem:[#allocation46_spill] sm:$0xff]  ;;  %v4912_v37 = vld [vmem:[#allocation51_spill] sm:$0xff] }
 0x101   : > { %v2833_v27 = vpack.c.bf16 %v4053_v23, %v4048_v28  ;;  %v2837_v17 = vpack.c.bf16 %v4083_v22, %v4069_v38  ;;  %v4908_v28 = vld [vmem:[#allocation40_spill] sm:$0xff]  ;;  %v4910_v38 = vld [vmem:[#allocation49_spill] sm:$0xff]  ;;  %v4911_v45 = vld [vmem:[#allocation50_spill] sm:$0xff] }
 0x102   : > { %1249 = vmatmul.mubr.f32.vlgmr.msra.gmra.mrb[6].mxu0 %v1248_v42  ;;  %2806 = vmatpush3.bf16.msra.mxu1 %v2805_v51  ;;  %v4909_v23 = vld [vmem:[#allocation48_spill] sm:$0xff]  ;;  %v4916_v22 = vld [vmem:[#allocation55_spill] sm:$0xff] }
 0x103   : > { %2810 = vmatpush3.bf16.msra.mxu0 %v2809_v57  ;;  %1616 = vmatprep.mubr.f32.mxu0 %v3997_v48  ;;  %v4903_v48 = vld [vmem:[#allocation42_spill] sm:$0xff]  ;;  %v4913_v54 = vld [vmem:[#allocation52_spill] sm:$0xff] }
 0x104   : > { %2812 = vmatprep.subr.bf16.mxu0 %v2811_v4  ;;  %2840 = vmatprep.subr.bf16.mxu1 %v3761_v18  ;;  %v2827_v59 = vpack.c.bf16 %v4015_v9, %v4903_v48  ;;  %v2835_v9 = vpack.c.bf16 %v4064_v35, %v4059_v44  ;;  %v4907_v35 = vld [vmem:[#allocation47_spill] sm:$0xff]  ;;  %v4915_v44 = vld [vmem:[#allocation54_spill] sm:$0xff] }
 0x105   : > { %1481 = vmatmul.mubr.f32.vlgmr.msra.gmra.mrb[6].mxu1 %v4300_v30 }
 0x106   : > { %2842 = vmatpush3.bf16.msra.mxu1 %v4897_v2  ;;  %1723 = vmatprep.mubr.f32.mxu1 %v4900_v11 }
 0x107   : > { %2814 = vmatpush3.bf16.msra.mxu0 %v2813_v13  ;;  %2844 = vmatprep.subr.bf16.mxu1 %v4899_v20 }
 0x108   : > { %2816 = vmatprep.subr.bf16.mxu0 %v2815_v10 }
 0x10a   : > { %2846 = vmatpush3.bf16.msra.mxu1 %v4197_v50 }
 0x10b   : > { %2818 = vmatpush3.bf16.msra.mxu0 %v2817_v60  ;;  %2848 = vmatprep.subr.bf16.mxu1 %v4220_v47 }
 0x10c   : > { %2820 = vmatprep.subr.bf16.mxu0 %v2819_v8 }
 0x10e   : > { %2850 = vmatpush3.bf16.msra.mxu1 %v4902_v25 }
 0x10f   : > { %2822 = vmatpush3.bf16.msra.mxu0 %v2821_v24  ;;  %2852 = vmatprep.subr.bf16.mxu1 %v4904_v0 }
 0x110   : > { %2824 = vmatprep.subr.bf16.mxu0 %v2823_v19 }
 0x112   : > { %2854 = vmatpush3.bf16.msra.mxu1 %v4271_v55 }
 0x113   : > { %2826 = vmatpush3.bf16.msra.mxu0 %v2825_v56  ;;  %2856 = vmatprep.subr.bf16.mxu1 %v4905_v1 }
 0x114   : > { %2828 = vmatprep.subr.bf16.mxu0 %v2827_v59 }
 0x116   : > { %2858 = vmatpush3.bf16.msra.mxu1 %v4297_v53 }
 0x117   : > { %2830 = vmatpush3.bf16.msra.mxu0 %v2829_v3  ;;  %2860 = vmatprep.subr.bf16.mxu1 %v4314_v31 }
 0x118   : > { %2832 = vmatprep.subr.bf16.mxu0 %v2831_v15 }
 0x11a   : > { %2862 = vmatpush3.bf16.msra.mxu1 %v4326_v63 }
 0x11b   : > { %2834 = vmatpush3.bf16.msra.mxu0 %v2833_v27  ;;  %2864 = vmatprep.subr.bf16.mxu1 %v4337_v26 }
 0x11c   : > { %2836 = vmatprep.subr.bf16.mxu0 %v2835_v9 }
 0x11e   : > { %2866 = vmatpush3.bf16.msra.mxu1 %v4358_v39 }
 0x11f   : > { %2838 = vmatpush3.bf16.msra.mxu0 %v2837_v17  ;;  %2868 = vmatprep.subr.bf16.mxu1 %v4364_v7 }
 0x120   : > { %2872 = vmatprep.subr.bf16.mxu0 %v4906_v43 }
 0x122   : > { %1619 = vmatmul.mubr.f32.vlgmr.msra.gmra.mrb[8].mxu0 %v4330_v58  ;;  %2870 = vmatpush3.bf16.msra.mxu1 %v4381_v32  ;;  %v4917_v58 = vld [vmem:[#allocation56_spill] sm:$0xff] }
 0x123   : > { %2874 = vmatpush3.bf16.msra.mxu0 %v4907_v35  ;;  %1893 = vmatprep.mubr.f32.mxu0 %v4908_v28 }
 0x124   : > { %2876 = vmatprep.subr.bf16.mxu0 %v4909_v23  ;;  %2904 = vmatprep.subr.bf16.mxu1 %v3761_v18  ;;  %v4914_v18 = vld [vmem:[#allocation53_spill] sm:$0xff] }
 0x125   : > { %1727 = vmatmul.mubr.f32.vlgmr.msra.gmra.mrb[8].mxu1 %v1246_v5  ;;  %v4918_v5 = vld [vmem:[#allocation57_spill] sm:$0xff] }
 0x126   : > { %2906 = vmatpush3.bf16.msra.mxu1 %v4897_v2  ;;  %1997 = vmatprep.mubr.f32.mxu1 %v4908_v28 }
 0x127   : > { %2878 = vmatpush3.bf16.msra.mxu0 %v4910_v38  ;;  %2908 = vmatprep.subr.bf16.mxu1 %v4899_v20 }
 0x128   : > { %2880 = vmatprep.subr.bf16.mxu0 %v4911_v45 }
 0x12a   : > { %2910 = vmatpush3.bf16.msra.mxu1 %v4197_v50  ;;  %v4919_v50 = vld [vmem:[#allocation58_spill] sm:$0xff] }
 0x12b   : > { %2882 = vmatpush3.bf16.msra.mxu0 %v4912_v37  ;;  %2912 = vmatprep.subr.bf16.mxu1 %v4220_v47  ;;  %v4920_v47 = vld [vmem:[#allocation59_spill] sm:$0xff] }
 0x12c   : > { %2884 = vmatprep.subr.bf16.mxu0 %v4913_v54 }
 0x12e   : > { %2914 = vmatpush3.bf16.msra.mxu1 %v4902_v25 }
 0x12f   : > { %2886 = vmatpush3.bf16.msra.mxu0 %v4914_v18  ;;  %2916 = vmatprep.subr.bf16.mxu1 %v4904_v0 }
 0x130   : > { %2888 = vmatprep.subr.bf16.mxu0 %v4915_v44 }
 0x132   : > { %2918 = vmatpush3.bf16.msra.mxu1 %v4271_v55 }
 0x133   : > { %2890 = vmatpush3.bf16.msra.mxu0 %v4916_v22  ;;  %2920 = vmatprep.subr.bf16.mxu1 %v4905_v1 }
 0x134   : > { %2892 = vmatprep.subr.bf16.mxu0 %v4917_v58 }
 0x136   : > { %2922 = vmatpush3.bf16.msra.mxu1 %v4297_v53 }
 0x137   : > { %2894 = vmatpush3.bf16.msra.mxu0 %v4918_v5  ;;  %2924 = vmatprep.subr.bf16.mxu1 %v4314_v31 }
 0x138   : > { %2896 = vmatprep.subr.bf16.mxu0 %v4919_v50 }
 0x13a   : > { %2926 = vmatpush3.bf16.msra.mxu1 %v4326_v63 }
 0x13b   : > { %2898 = vmatpush3.bf16.msra.mxu0 %v4920_v47  ;;  %2928 = vmatprep.subr.bf16.mxu1 %v4337_v26 }
 0x13c   : > { %2900 = vmatprep.subr.bf16.mxu0 %v4921_v34 }
 0x13e   : > { %2930 = vmatpush3.bf16.msra.mxu1 %v4358_v39 }
 0x13f   : > { %2902 = vmatpush3.bf16.msra.mxu0 %v4922_v36  ;;  %2932 = vmatprep.subr.bf16.mxu1 %v4364_v7 }
 0x142   : > { %1895 = vmatmul.mubr.f32.vlgmr.msra.gmra.mrb[10].mxu0 %v4300_v30  ;;  %2934 = vmatpush3.bf16.msra.mxu1 %v4381_v32 }
 0x145   : > { %1999 = vmatmul.mubr.f32.vlgmr.msra.gmra.mrb[10].mxu1 %v4300_v30 }
 0x169   : > { %v2163_v53 = vpop.f32.mrb[0].mxu0 }
 0x16a   : > { %v2164_v55 = vpop.f32.mrb[1].mxu0 }
 0x16b   : > { %v2165_v31 = vadd.f32 %v2164_v55, %v2163_v53 }
 0x16c   : > { %v2198_v52 = vpop.f32.mrb[0].mxu1 }
 0x16d   : > { %v2199_v40 = vpop.f32.mrb[1].mxu1 }
 0x16e   : > { %v2200_v63 = vadd.f32 %v2199_v40, %v2198_v52 }
 0x170   : > { %v621_v41 = vadd.f32 %v2200_v63, %v2165_v31 }
 0x189   : > { %v2233_v26 = vpop.f32.mrb[2].mxu0 }
 0x18a   : > { %v2234_v12 = vpop.f32.mrb[3].mxu0 }
 0x18b   : > { %v2235_v61 = vadd.f32 %v2234_v12, %v2233_v26 }
 0x18d   : > { %v759_v46 = vadd.f32 %v2235_v61, %v621_v41  ;;  %v2268_v39 = vpop.f32.mrb[2].mxu1 }
 0x18e   : > { %v2269_v14 = vpop.f32.mrb[3].mxu1 }
 0x18f   : > { %v2270_v7 = vadd.f32 %v2269_v14, %v2268_v39 }
 0x191   : > { %v867_v29 = vadd.f32 %v2270_v7, %v759_v46 }
 0x1a9   : > { %v2303_v62 = vpop.f32.mrb[4].mxu0 }
 0x1aa   : > { %v2304_v33 = vpop.f32.mrb[5].mxu0 }
 0x1ab   : > { %v2305_v32 = vadd.f32 %v2304_v33, %v2303_v62 }
 0x1ad   : > { %v1035_v42 = vadd.f32 %v2305_v32, %v867_v29 }
 0x1ae   : > { %v2338_v30 = vpop.f32.mrb[4].mxu1 }
 0x1af   : > { %v2339_v57 = vpop.f32.mrb[5].mxu1 }
 0x1b0   : > { %v2340_v4 = vadd.f32 %v2339_v57, %v2338_v30 }
 0x1b2   : > { %v1139_v51 = vadd.f32 %v2340_v4, %v1035_v42 }
 0x1d5   : > { %v2373_v13 = vpop.f32.mrb[6].mxu0 }
 0x1d6   : > { %v2374_v10 = vpop.f32.mrb[7].mxu0 }
 0x1d7   : > { %v2375_v16 = vadd.f32 %v2374_v10, %v2373_v13 }
 0x1d8   : > { %v2408_v60 = vpop.f32.mrb[6].mxu1 }
 0x1d9   : > { %v1251_v6 = vadd.f32 %v2375_v16, %v1139_v51  ;;  %v2409_v2 = vpop.f32.mrb[7].mxu1 }
 0x1da   : > { %v2410_v21 = vadd.f32 %v2409_v2, %v2408_v60 }
 0x1dc   : > { %v1483_v8 = vadd.f32 %v2410_v21, %v1251_v6 }
 0x1f5   : > { %v2443_v20 = vpop.f32.mrb[8].mxu0 }
 0x1f6   : > { %v2444_v11 = vpop.f32.mrb[9].mxu0 }
 0x1f7   : > { %v2445_v24 = vadd.f32 %v2444_v11, %v2443_v20 }
 0x1f8   : > { %v2478_v49 = vpop.f32.mrb[8].mxu1 }
 0x1f9   : > { %v1621_v19 = vadd.f32 %v2445_v24, %v1483_v8  ;;  %v2479_v56 = vpop.f32.mrb[9].mxu1 }
 0x1fa   : > { %v2480_v25 = vadd.f32 %v2479_v56, %v2478_v49 }
 0x1fc   : > { %v1729_v48 = vadd.f32 %v2480_v25, %v1621_v19 }
 0x215   : > { %v2513_v59 = vpop.f32.mrb[10].mxu0 }
 0x216   : > { %v2514_v0 = vpop.f32.mrb[11].mxu0 }
 0x217   : > { %v2515_v3 = vadd.f32 %v2514_v0, %v2513_v59 }
 0x218   : > { %v2548_v1 = vpop.f32.mrb[10].mxu1 }
 0x219   : > { %v1897_v15 = vadd.f32 %v2515_v3, %v1729_v48  ;;  %v2549_v27 = vpop.f32.mrb[11].mxu1 }
 0x21a   : > { %v2550_v9 = vadd.f32 %v2549_v27, %v2548_v1 }
 0x21c   : > { %v2001_v17 = vadd.f32 %v2550_v9, %v1897_v15 }
 0x21e   : > { %2004 = vst [vmem:[%s192_s21] sm:$0x3] %v2001_v17 }
 0x21f   : > { %3083 = shalt.err (!%p3080_p5)
}
 0x220   : > { %s3084_s29 = scalar_lea.hbm %s4481_s16, 32  ;;  %s3088_s18 = scalar_lea.hbm %s4532_s2, 64 }
 0x221   : > { %p3085_p9 = scmp.ne.s32.totalorder %s4481_s16, %s3084_s29  ;;  %p3089_p7 = scmp.lt.u32.totalorder %s4481_s16, %s4532_s2 }
 0x222   : > { %p3090_p3 = scmp.lt.u32.totalorder %s3088_s18, %s3084_s29  ;;  %p3092_p4 = scmp.lt.u32.totalorder %s3084_s29, %s4481_s16 }
 0x223   : > { %p3086_p1 = pnand %p3085_p9, %p3275_p10 }
 0x224   : > { %p3091_p13 = por %p3090_p3, %p3089_p7 }
 0x225   : > { %p3087_p2 = pneg %p3086_p1 }
 0x226   : > { %p3093_p6 = por %p3092_p4, %p3091_p13 }
 0x228   : > { %p3094_p8 = pnand %p3093_p6, %p3087_p2 }
 0x22a   : > { %3097 = shalt.err (!%p3094_p8)
}
 0x22b   : > { %2941 = dma.vmem_to_hbm [thread:$0]  (%p3275_p10), %s4483_s4, 32, %s4481_s16, %s2006_s24  }
 0x22c PF: > { %s2032_s15 = sand.u32 1, %s3136_s9   ;;  %p4923_p12 = scmp.ne.s32.totalorder %s4639_s20, 0 }
 0x22d   : > { %p4924_p11 = scmp.ge.s32.totalorder %s3156_s14, 2  ;;  %s2033_s17 = scalar_lea.sflag [#allocation4], %s2032_s15 }
 0x22f   : > { %p2952_p0 = pnand %p4924_p11, %p4923_p12 }
 0x231   : > { %3131 = dma.done.wait (!%p2952_p0), %s2033_s17, 32  }
 0x232   : > { %3133 = vsyncadd (!%p2952_p0), %s2033_s17, 4294967264  ;;  %s19_s14 = sadd.s32 1, %s3156_s14   ;;  %s4925_s9 = smov %s3140_s10 }
 0x233   : > { %p16_p5 = scmp.ge.s32.totalorder %s19_s14, 4   ;;  %s4926_s10 = smov %s3144_s11 }
 0x234   : > { %s4927_s11 = smov %s3284_s28  ;;  %s4928_s12 = smov %s3152_s13 }
 0x235   : > { %s4929_s13 = smov %s4931_s25  ;;  %18 = sbr.rel (!%p16_p5) target bundleno = 7 (0x7), region = 78 }
 0x23c   :  { %2038 = vsyncpa [#allocation3], 1 }
 0x23d   :  { %2040 = vsyncpa [#allocation3 + $0x1], 1 }
 0x23e   :  { %2041 = vsyncpa [#allocation6], 1 }
 0x23f   :  { %2043 = vsyncpa [#allocation6 + $0x1], 1 }
 0x240   :  { %2044 = vsyncpa [#allocation4], 1 }
 0x241   :  { %2046 = vsyncpa [#allocation4 + $0x1], 1 }

</bundles_post_ra>
